<compile_context>
chip_gen: v7x
topology: tpu7x:2x2x1
jax: 0.10.0
libtpu: 0.0.40
codegen_flags: <defaults>
</compile_context>

<pallas_src>
import math
import functools

import jax
import jax.numpy as jnp
from jax.experimental import pallas as pl
from jax.experimental.pallas import tpu as pltpu


def _layernorm(x, w, b, eps=1e-5):
    mean = jnp.mean(x, axis=-1, keepdims=True)
    var = jnp.mean(jnp.square(x - mean), axis=-1, keepdims=True)
    return (x - mean) * jax.lax.rsqrt(var + eps) * w + b


def encoder_layer_kernel(
    x_ref, qkv_bias_ref,
    ln_pre_w_ref, ln_pre_b_ref, ln_post_w_ref, ln_post_b_ref, gamma_ref,
    wqkv_ref, wo_ref, bo_ref, w1_ref, b1_ref, w2_ref, b2_ref,
    out_ref, attn_ref,
    ctx_ref,
    *, num_heads):
    xb = x_ref[...]                                   # (Bb, L, D) f32
    Bb, L, D = xb.shape
    dh = D // num_heads
    rows = Bb * L
    x2d = xb.reshape(rows, D)

    ln_pre_w, ln_pre_b = ln_pre_w_ref[0], ln_pre_b_ref[0]
    ln_post_w, ln_post_b = ln_post_w_ref[0], ln_post_b_ref[0]
    gamma = gamma_ref[0]

    # --- pre_norm[0]; fused QKV projection (PE + 1/sqrt(dh) folded into the
    #     packed bf16 weight / per-position f32 bias by the wrapper) ---
    v_in = _layernorm(x2d, ln_pre_w, ln_pre_b)                         # f32 VPU
    qkv = jnp.dot(v_in.astype(jnp.bfloat16), wqkv_ref[...],
                  preferred_element_type=jnp.float32)                  # (rows, 3D)
    qkv = qkv.reshape(Bb, L, 3 * D) + qkv_bias_ref[...][None]

    # --- multi-head attention, batched over the Bb sequences of this block ---
    attn_sum = jnp.zeros((Bb, L, L), jnp.float32)
    for h in range(num_heads):            # static head loop; per-head temporaries
        o = h * dh                        # die each iteration, ctx goes to scratch
        qh = qkv[:, :, o:o + dh].astype(jnp.bfloat16)                  # (Bb, L, dh)
        kh = qkv[:, :, D + o:D + o + dh].astype(jnp.bfloat16)
        vh = qkv[:, :, 2 * D + o:2 * D + o + dh].astype(jnp.bfloat16)
        s = jnp.einsum('bqd,bkd->bqk', qh, kh,
                       preferred_element_type=jnp.float32)             # (Bb, L, L)
        s = s - jnp.max(s, axis=-1, keepdims=True)
        e = jnp.exp(s)
        p = e * pl.reciprocal(jnp.sum(e, axis=-1, keepdims=True), approx=True)
        attn_sum = attn_sum + p
        ctx_h = jnp.einsum('bqk,bkd->bqd', p.astype(jnp.bfloat16), vh,
                           preferred_element_type=jnp.float32)         # (Bb, L, dh)
        ctx_ref[:, o:o + dh] = ctx_h.reshape(rows, dh)

    attn_out = jnp.dot(ctx_ref[...].astype(jnp.bfloat16), wo_ref[...],
                       preferred_element_type=jnp.float32) + bo_ref[0]

    # --- residual 1: x + gamma * post_norm(attn_out)  (dropout = identity) ---
    x1 = x2d + gamma * _layernorm(attn_out, ln_post_w, ln_post_b)

    # --- feed-forward: linear2(relu(linear1(pre_norm(x1)))) ---
    n2 = _layernorm(x1, ln_pre_w, ln_pre_b)
    h1 = jnp.maximum(
        jnp.dot(n2.astype(jnp.bfloat16), w1_ref[...],
                preferred_element_type=jnp.float32) + b1_ref[0], 0.0)
    ff = jnp.dot(h1.astype(jnp.bfloat16), w2_ref[...],
                 preferred_element_type=jnp.float32) + b2_ref[0]

    # --- residual 2: x1 + gamma * post_norm(ff) ---
    x2 = x1 + gamma * _layernorm(ff, ln_post_w, ln_post_b)

    out_ref[...] = x2.reshape(Bb, L, D).astype(out_ref.dtype)
    attn_ref[...] = (attn_sum * (1.0 / num_heads)).astype(attn_ref.dtype)


def sinusoidal_pe(length, dim):
    position = jnp.arange(length, dtype=jnp.float32)[:, None]
    div_term = jnp.exp(jnp.arange(0, dim, 2, dtype=jnp.float32)
                       * -(math.log(10000.0) / dim))
    pe = jnp.zeros((length, dim), jnp.float32)
    pe = pe.at[:, 0::2].set(jnp.sin(position * div_term))
    pe = pe.at[:, 1::2].set(jnp.cos(position * div_term))
    return pe


def init_params(key, model_dim, dim_feedforward):
    D, F = model_dim, dim_feedforward
    ks = jax.random.split(key, 8)
    s_attn = 1.0 / math.sqrt(D)
    s_ff1 = 1.0 / math.sqrt(D)
    s_ff2 = 1.0 / math.sqrt(F)
    return dict(
        ln_pre_w=jnp.ones((1, D), jnp.float32),
        ln_pre_b=jnp.zeros((1, D), jnp.float32),
        ln_post_w=jnp.ones((1, D), jnp.float32),
        ln_post_b=jnp.zeros((1, D), jnp.float32),
        gamma=jnp.full((1, D), 0.1, jnp.float32),          # shared layer-scale
        wq=jax.random.normal(ks[0], (D, D), jnp.float32) * s_attn,
        bq=jnp.zeros((1, D), jnp.float32),
        wk=jax.random.normal(ks[1], (D, D), jnp.float32) * s_attn,
        bk=jnp.zeros((1, D), jnp.float32),
        wv=jax.random.normal(ks[2], (D, D), jnp.float32) * s_attn,
        bv=jnp.zeros((1, D), jnp.float32),
        wo=jax.random.normal(ks[3], (D, D), jnp.float32) * s_attn,
        bo=jax.random.normal(ks[4], (1, D), jnp.float32) * s_attn,
        w1=jax.random.normal(ks[5], (D, F), jnp.float32) * s_ff1,
        b1=jax.random.normal(ks[6], (1, F), jnp.float32) * s_ff1,
        w2=jax.random.normal(ks[7], (F, D), jnp.float32) * s_ff2,
        b2=jnp.zeros((1, D), jnp.float32),
    )


def _pick_block_batch(B, L, target_rows=256):
    """Rows per grid step ~target_rows to fill the MXU M dim, but keep >=2 grid
    iterations when possible so both v7x TensorCores get work."""
    bb = min(B, max(1, target_rows // max(L, 1)))
    while bb > 1 and (B + bb - 1) // bb < 2:
        bb -= 1
    while B % bb:                       # exact division keeps BlockSpecs simple
        bb -= 1
    return bb


def encoder_layer(x, params, num_heads, *, block_batch=None):
    B, L, D = x.shape
    dh = D // num_heads
    scale = 1.0 / math.sqrt(dh)
    pe = sinusoidal_pe(L, D)
    p = params

    # Fold positional encoding + query scale into one packed bf16 QKV weight
    # and a per-position f32 bias:  q = scale*((v_in+pe)@wq + bq)
    #                                 = v_in@(scale*wq) + (pe@(scale*wq) + scale*bq)
    wq_s = p['wq'] * scale
    bq_s = p['bq'][0] * scale
    wqkv = jnp.concatenate([wq_s, p['wk'], p['wv']], axis=1).astype(jnp.bfloat16)
    qkv_bias = jnp.concatenate(
        [pe @ wq_s + bq_s,
         pe @ p['wk'] + p['bk'][0],
         jnp.broadcast_to(p['bv'][0], (L, D))], axis=1).astype(jnp.float32)

    wo = p['wo'].astype(jnp.bfloat16)
    w1 = p['w1'].astype(jnp.bfloat16)
    w2 = p['w2'].astype(jnp.bfloat16)

    Bb = block_batch if block_batch is not None else _pick_block_batch(B, L)
    nb = B // Bb
    rows = Bb * L

    def full_spec(a):
        nd = a.ndim
        return pl.BlockSpec(a.shape, lambda b, _n=nd: (0,) * _n)

    small = [p['ln_pre_w'], p['ln_pre_b'], p['ln_post_w'], p['ln_post_b'],
             p['gamma']]
    big = [wqkv, wo, p['bo'], w1, p['b1'], w2, p['b2']]

    in_specs = ([pl.BlockSpec((Bb, L, D), lambda b: (b, 0, 0)),
                 full_spec(qkv_bias)]
                + [full_spec(a) for a in small]
                + [full_spec(a) for a in big])

    kernel = functools.partial(encoder_layer_kernel, num_heads=num_heads)
    out, attn = pl.pallas_call(
        kernel,
        grid=(nb,),
        in_specs=in_specs,
        out_specs=(pl.BlockSpec((Bb, L, D), lambda b: (b, 0, 0)),
                   pl.BlockSpec((Bb, L, L), lambda b: (b, 0, 0))),
        out_shape=(jax.ShapeDtypeStruct((B, L, D), jnp.float32),
                   jax.ShapeDtypeStruct((B, L, L), jnp.float32)),
        scratch_shapes=[pltpu.VMEM((rows, D), jnp.float32)],   # per-head ctx slab
        compiler_params=pltpu.CompilerParams(
            dimension_semantics=("parallel",),
            vmem_limit_bytes=64 * 1024 * 1024),
    )(x, qkv_bias, *small, *big)
    return out, attn


def encoder_layer_ref(x, params, num_heads):
    """Pure-JAX f32 reference with identical semantics (sanity check)."""
    B, L, D = x.shape
    dh = D // num_heads
    pe = sinusoidal_pe(L, D)
    ln = lambda t, w, b: _layernorm(t, w[0], b[0])
    p = params
    v_in = ln(x, p['ln_pre_w'], p['ln_pre_b'])
    qk_in = v_in + pe[None]
    q = qk_in @ p['wq'] + p['bq'][0]
    k = qk_in @ p['wk'] + p['bk'][0]
    v = v_in @ p['wv'] + p['bv'][0]
    qh = q.reshape(B, L, num_heads, dh).transpose(0, 2, 1, 3)
    kh = k.reshape(B, L, num_heads, dh).transpose(0, 2, 1, 3)
    vh = v.reshape(B, L, num_heads, dh).transpose(0, 2, 1, 3)
    s = jnp.einsum('bhld,bhmd->bhlm', qh, kh) / math.sqrt(dh)
    pw = jax.nn.softmax(s, axis=-1)
    ctx = jnp.einsum('bhlm,bhmd->bhld', pw, vh).transpose(0, 2, 1, 3).reshape(B, L, D)
    attn_out = ctx @ p['wo'] + p['bo'][0]
    x1 = x + p['gamma'][0] * ln(attn_out, p['ln_post_w'], p['ln_post_b'])
    n2 = ln(x1, p['ln_pre_w'], p['ln_pre_b'])
    ff = jnp.maximum(n2 @ p['w1'] + p['b1'][0], 0.0) @ p['w2'] + p['b2'][0]
    x2 = x1 + p['gamma'][0] * ln(ff, p['ln_post_w'], p['ln_post_b'])
    return x2, pw.mean(axis=1)


if __name__ == "__main__":
    B, L, D, H, F = 2, 8, 32, 4, 64   # batch, seq, model_dim, heads, dim_feedforward
    key = jax.random.PRNGKey(0)
    kx, kp = jax.random.split(key)
    x = jax.random.normal(kx, (B, L, D), jnp.float32)
    params = init_params(kp, D, F)

    out, attn = encoder_layer(x, params, H)
    jax.block_until_ready((out, attn))

    out_ref, attn_ref = encoder_layer_ref(x, params, H)
    assert out.shape == (B, L, D) and attn.shape == (B, L, L)
    # bf16 matmul operands + approx reciprocal -> slightly looser tolerance
    assert jnp.allclose(out, out_ref, rtol=2e-2, atol=2e-2)
    assert jnp.allclose(attn, attn_ref, rtol=2e-2, atol=2e-2)
    print("KERNEL_OK")
</pallas_src>

<mosaic_0001>
module attributes {stable_mosaic.version = 11 : i64} {
  func.func @encoder_layer_kernel(%arg0: i32, %arg1: memref<1x8x32xf32, #tpu.memory_space<vmem>>, %arg2: memref<8x96xf32, #tpu.memory_space<vmem>>, %arg3: memref<1x32xf32, #tpu.memory_space<vmem>>, %arg4: memref<1x32xf32, #tpu.memory_space<vmem>>, %arg5: memref<1x32xf32, #tpu.memory_space<vmem>>, %arg6: memref<1x32xf32, #tpu.memory_space<vmem>>, %arg7: memref<1x32xf32, #tpu.memory_space<vmem>>, %arg8: memref<32x96xbf16, #tpu.memory_space<vmem>>, %arg9: memref<32x32xbf16, #tpu.memory_space<vmem>>, %arg10: memref<1x32xf32, #tpu.memory_space<vmem>>, %arg11: memref<32x64xbf16, #tpu.memory_space<vmem>>, %arg12: memref<1x64xf32, #tpu.memory_space<vmem>>, %arg13: memref<64x32xbf16, #tpu.memory_space<vmem>>, %arg14: memref<1x32xf32, #tpu.memory_space<vmem>>, %arg15: memref<1x8x32xf32, #tpu.memory_space<vmem>>, %arg16: memref<1x8x8xf32, #tpu.memory_space<vmem>>, %arg17: memref<8x32xf32, #tpu.memory_space<vmem>>) attributes {dimension_semantics = [#tpu.dimension_semantics<parallel>], iteration_bounds = array<i64: 2>, scalar_prefetch = 0 : i64, scratch_operands = 1 : i64, tpu.core_type = #tpu.core_type<tc>, window_params = [{transform_indices = @transform_0, window_bounds = array<i64: 1, 8, 32>}, {pipeline_mode = #tpu.pipeline_mode<synchronous>, transform_indices = @transform_1, window_bounds = array<i64: 8, 96>}, {pipeline_mode = #tpu.pipeline_mode<synchronous>, transform_indices = @transform_2, window_bounds = array<i64: 1, 32>}, {pipeline_mode = #tpu.pipeline_mode<synchronous>, transform_indices = @transform_3, window_bounds = array<i64: 1, 32>}, {pipeline_mode = #tpu.pipeline_mode<synchronous>, transform_indices = @transform_4, window_bounds = array<i64: 1, 32>}, {pipeline_mode = #tpu.pipeline_mode<synchronous>, transform_indices = @transform_5, window_bounds = array<i64: 1, 32>}, {pipeline_mode = #tpu.pipeline_mode<synchronous>, transform_indices = @transform_6, window_bounds = array<i64: 1, 32>}, {pipeline_mode = #tpu.pipeline_mode<synchronous>, transform_indices = @transform_7, window_bounds = array<i64: 32, 96>}, {pipeline_mode = #tpu.pipeline_mode<synchronous>, transform_indices = @transform_8, window_bounds = array<i64: 32, 32>}, {pipeline_mode = #tpu.pipeline_mode<synchronous>, transform_indices = @transform_9, window_bounds = array<i64: 1, 32>}, {pipeline_mode = #tpu.pipeline_mode<synchronous>, transform_indices = @transform_10, window_bounds = array<i64: 32, 64>}, {pipeline_mode = #tpu.pipeline_mode<synchronous>, transform_indices = @transform_11, window_bounds = array<i64: 1, 64>}, {pipeline_mode = #tpu.pipeline_mode<synchronous>, transform_indices = @transform_12, window_bounds = array<i64: 64, 32>}, {pipeline_mode = #tpu.pipeline_mode<synchronous>, transform_indices = @transform_13, window_bounds = array<i64: 1, 32>}, {transform_indices = @transform_14, window_bounds = array<i64: 1, 8, 32>}, {transform_indices = @transform_15, window_bounds = array<i64: 1, 8, 8>}]} {
    %c0 = arith.constant 0 : index
    %c0_0 = arith.constant 0 : index
    %c0_1 = arith.constant 0 : index
    %0 = vector.load %arg1[%c0, %c0_0, %c0_1] : memref<1x8x32xf32, #tpu.memory_space<vmem>>, vector<1x8x32xf32>
    %1 = vector.shape_cast %0 : vector<1x8x32xf32> to vector<8x32xf32>
    %c0_2 = arith.constant 0 : index
    %c0_3 = arith.constant 0 : index
    %2 = vector.load %arg3[%c0_2, %c0_3] : memref<1x32xf32, #tpu.memory_space<vmem>>, vector<1x32xf32>
    %3 = vector.shape_cast %2 : vector<1x32xf32> to vector<32xf32>
    %c0_4 = arith.constant 0 : index
    %c0_5 = arith.constant 0 : index
    %4 = vector.load %arg4[%c0_4, %c0_5] : memref<1x32xf32, #tpu.memory_space<vmem>>, vector<1x32xf32>
    %5 = vector.shape_cast %4 : vector<1x32xf32> to vector<32xf32>
    %c0_6 = arith.constant 0 : index
    %c0_7 = arith.constant 0 : index
    %6 = vector.load %arg5[%c0_6, %c0_7] : memref<1x32xf32, #tpu.memory_space<vmem>>, vector<1x32xf32>
    %7 = vector.shape_cast %6 : vector<1x32xf32> to vector<32xf32>
    %c0_8 = arith.constant 0 : index
    %c0_9 = arith.constant 0 : index
    %8 = vector.load %arg6[%c0_8, %c0_9] : memref<1x32xf32, #tpu.memory_space<vmem>>, vector<1x32xf32>
    %9 = vector.shape_cast %8 : vector<1x32xf32> to vector<32xf32>
    %c0_10 = arith.constant 0 : index
    %c0_11 = arith.constant 0 : index
    %10 = vector.load %arg7[%c0_10, %c0_11] : memref<1x32xf32, #tpu.memory_space<vmem>>, vector<1x32xf32>
    %11 = vector.shape_cast %10 : vector<1x32xf32> to vector<32xf32>
    %cst = arith.constant dense<0.000000e+00> : vector<8xf32>
    %12 = vector.multi_reduction <add>, %1, %cst [1] : vector<8x32xf32> to vector<8xf32>
    %13 = vector.shape_cast %12 : vector<8xf32> to vector<8x1xf32>
    %cst_12 = arith.constant 3.200000e+01 : f32
    %14 = vector.broadcast %cst_12 : f32 to vector<8x1xf32>
    %15 = arith.divf %13, %14 : vector<8x1xf32>
    %16 = vector.broadcast %15 : vector<8x1xf32> to vector<8x32xf32>
    %17 = arith.subf %1, %16 : vector<8x32xf32>
    %18 = arith.mulf %17, %17 : vector<8x32xf32>
    %cst_13 = arith.constant dense<0.000000e+00> : vector<8xf32>
    %19 = vector.multi_reduction <add>, %18, %cst_13 [1] : vector<8x32xf32> to vector<8xf32>
    %20 = vector.shape_cast %19 : vector<8xf32> to vector<8x1xf32>
    %cst_14 = arith.constant 3.200000e+01 : f32
    %21 = vector.broadcast %cst_14 : f32 to vector<8x1xf32>
    %22 = arith.divf %20, %21 : vector<8x1xf32>
    %23 = vector.broadcast %15 : vector<8x1xf32> to vector<8x32xf32>
    %24 = arith.subf %1, %23 : vector<8x32xf32>
    %cst_15 = arith.constant 9.99999974E-6 : f32
    %25 = vector.broadcast %cst_15 : f32 to vector<8x1xf32>
    %26 = arith.addf %22, %25 : vector<8x1xf32>
    %27 = math.rsqrt %26 : vector<8x1xf32>
    %28 = vector.broadcast %27 : vector<8x1xf32> to vector<8x32xf32>
    %29 = arith.mulf %24, %28 : vector<8x32xf32>
    %30 = vector.shape_cast %3 : vector<32xf32> to vector<1x32xf32>
    %31 = vector.broadcast %30 : vector<1x32xf32> to vector<8x32xf32>
    %32 = arith.mulf %29, %31 : vector<8x32xf32>
    %33 = vector.shape_cast %5 : vector<32xf32> to vector<1x32xf32>
    %34 = vector.broadcast %33 : vector<1x32xf32> to vector<8x32xf32>
    %35 = arith.addf %32, %34 : vector<8x32xf32>
    %36 = arith.truncf %35 : vector<8x32xf32> to vector<8x32xbf16>
    %c0_16 = arith.constant 0 : index
    %c0_17 = arith.constant 0 : index
    %37 = vector.load %arg8[%c0_16, %c0_17] : memref<32x96xbf16, #tpu.memory_space<vmem>>, vector<32x96xbf16>
    %cst_18 = arith.constant dense<0.000000e+00> : vector<8x96xf32>
    %38 = tpu.matmul %36, %37, %cst_18 {dimension_numbers = #tpu.dot_dimension_numbers<[1], [0], [0], [1], [0, 0, 1, 1], [], []>} : vector<8x32xbf16>, vector<32x96xbf16>, vector<8x96xf32> -> vector<8x96xf32>
    %39 = vector.shape_cast %38 : vector<8x96xf32> to vector<1x8x96xf32>
    %c0_19 = arith.constant 0 : index
    %c0_20 = arith.constant 0 : index
    %40 = vector.load %arg2[%c0_19, %c0_20] : memref<8x96xf32, #tpu.memory_space<vmem>>, vector<8x96xf32>
    %41 = vector.shape_cast %40 : vector<8x96xf32> to vector<1x8x96xf32>
    %42 = arith.addf %39, %41 : vector<1x8x96xf32>
    %cst_21 = arith.constant 0.000000e+00 : f32
    %43 = vector.broadcast %cst_21 : f32 to vector<1x8x8xf32>
    %44 = vector.extract_strided_slice %42 {offsets = [0, 0, 0], sizes = [1, 8, 8], strides = [1, 1, 1]} : vector<1x8x96xf32> to vector<1x8x8xf32>
    %45 = arith.truncf %44 : vector<1x8x8xf32> to vector<1x8x8xbf16>
    %46 = vector.extract_strided_slice %42 {offsets = [0, 0, 32], sizes = [1, 8, 8], strides = [1, 1, 1]} : vector<1x8x96xf32> to vector<1x8x8xf32>
    %47 = arith.truncf %46 : vector<1x8x8xf32> to vector<1x8x8xbf16>
    %48 = vector.extract_strided_slice %42 {offsets = [0, 0, 64], sizes = [1, 8, 8], strides = [1, 1, 1]} : vector<1x8x96xf32> to vector<1x8x8xf32>
    %49 = arith.truncf %48 : vector<1x8x8xf32> to vector<1x8x8xbf16>
    "tpu.trace_start"() <{level = 10 : i32, message = "bqd,bkd->bqk"}> : () -> ()
    %cst_22 = arith.constant dense<0.000000e+00> : vector<1x8x8xf32>
    %50 = tpu.matmul %45, %47, %cst_22 {dimension_numbers = #tpu.dot_dimension_numbers<[2], [2], [1], [1], [0, 0, 0, 1, 1, 1], [0], [0]>} : vector<1x8x8xbf16>, vector<1x8x8xbf16>, vector<1x8x8xf32> -> vector<1x8x8xf32>
    "tpu.trace_stop"() : () -> ()
    %cst_23 = arith.constant dense<0xFF800000> : vector<1x8xf32>
    %51 = vector.multi_reduction <maximumf>, %50, %cst_23 [2] : vector<1x8x8xf32> to vector<1x8xf32>
    %52 = vector.shape_cast %51 : vector<1x8xf32> to vector<1x8x1xf32>
    %53 = vector.broadcast %52 : vector<1x8x1xf32> to vector<1x8x8xf32>
    %54 = arith.subf %50, %53 : vector<1x8x8xf32>
    %55 = math.exp %54 : vector<1x8x8xf32>
    %cst_24 = arith.constant dense<0.000000e+00> : vector<1x8xf32>
    %56 = vector.multi_reduction <add>, %55, %cst_24 [2] : vector<1x8x8xf32> to vector<1x8xf32>
    %57 = vector.shape_cast %56 : vector<1x8xf32> to vector<1x8x1xf32>
    %58 = tpu.reciprocal %57 {approx = true} : vector<1x8x1xf32> -> vector<1x8x1xf32>
    %59 = vector.broadcast %58 : vector<1x8x1xf32> to vector<1x8x8xf32>
    %60 = arith.mulf %55, %59 : vector<1x8x8xf32>
    %61 = arith.addf %43, %60 : vector<1x8x8xf32>
    %62 = arith.truncf %60 : vector<1x8x8xf32> to vector<1x8x8xbf16>
    "tpu.trace_start"() <{level = 10 : i32, message = "bqk,bkd->bqd"}> : () -> ()
    %cst_25 = arith.constant dense<0.000000e+00> : vector<1x8x8xf32>
    %63 = tpu.matmul %62, %49, %cst_25 {dimension_numbers = #tpu.dot_dimension_numbers<[2], [1], [1], [2], [0, 0, 0, 1, 1, 2], [0], [0]>} : vector<1x8x8xbf16>, vector<1x8x8xbf16>, vector<1x8x8xf32> -> vector<1x8x8xf32>
    "tpu.trace_stop"() : () -> ()
    %64 = vector.shape_cast %63 : vector<1x8x8xf32> to vector<8x8xf32>
    %c0_26 = arith.constant 0 : index
    %c0_27 = arith.constant 0 : index
    %65 = vector.load %arg17[%c0_26, %c0_27] : memref<8x32xf32, #tpu.memory_space<vmem>>, vector<8x8xf32>
    tpu.vector_store %arg17[%c0_26, %c0_27], %64 {strides = array<i32>} : memref<8x32xf32, #tpu.memory_space<vmem>>, vector<8x8xf32>,
    %66 = vector.extract_strided_slice %42 {offsets = [0, 0, 8], sizes = [1, 8, 8], strides = [1, 1, 1]} : vector<1x8x96xf32> to vector<1x8x8xf32>
    %67 = arith.truncf %66 : vector<1x8x8xf32> to vector<1x8x8xbf16>
    %68 = vector.extract_strided_slice %42 {offsets = [0, 0, 40], sizes = [1, 8, 8], strides = [1, 1, 1]} : vector<1x8x96xf32> to vector<1x8x8xf32>
    %69 = arith.truncf %68 : vector<1x8x8xf32> to vector<1x8x8xbf16>
    %70 = vector.extract_strided_slice %42 {offsets = [0, 0, 72], sizes = [1, 8, 8], strides = [1, 1, 1]} : vector<1x8x96xf32> to vector<1x8x8xf32>
    %71 = arith.truncf %70 : vector<1x8x8xf32> to vector<1x8x8xbf16>
    "tpu.trace_start"() <{level = 10 : i32, message = "bqd,bkd->bqk"}> : () -> ()
    %cst_28 = arith.constant dense<0.000000e+00> : vector<1x8x8xf32>
    %72 = tpu.matmul %67, %69, %cst_28 {dimension_numbers = #tpu.dot_dimension_numbers<[2], [2], [1], [1], [0, 0, 0, 1, 1, 1], [0], [0]>} : vector<1x8x8xbf16>, vector<1x8x8xbf16>, vector<1x8x8xf32> -> vector<1x8x8xf32>
    "tpu.trace_stop"() : () -> ()
    %cst_29 = arith.constant dense<0xFF800000> : vector<1x8xf32>
    %73 = vector.multi_reduction <maximumf>, %72, %cst_29 [2] : vector<1x8x8xf32> to vector<1x8xf32>
    %74 = vector.shape_cast %73 : vector<1x8xf32> to vector<1x8x1xf32>
    %75 = vector.broadcast %74 : vector<1x8x1xf32> to vector<1x8x8xf32>
    %76 = arith.subf %72, %75 : vector<1x8x8xf32>
    %77 = math.exp %76 : vector<1x8x8xf32>
    %cst_30 = arith.constant dense<0.000000e+00> : vector<1x8xf32>
    %78 = vector.multi_reduction <add>, %77, %cst_30 [2] : vector<1x8x8xf32> to vector<1x8xf32>
    %79 = vector.shape_cast %78 : vector<1x8xf32> to vector<1x8x1xf32>
    %80 = tpu.reciprocal %79 {approx = true} : vector<1x8x1xf32> -> vector<1x8x1xf32>
    %81 = vector.broadcast %80 : vector<1x8x1xf32> to vector<1x8x8xf32>
    %82 = arith.mulf %77, %81 : vector<1x8x8xf32>
    %83 = arith.addf %61, %82 : vector<1x8x8xf32>
    %84 = arith.truncf %82 : vector<1x8x8xf32> to vector<1x8x8xbf16>
    "tpu.trace_start"() <{level = 10 : i32, message = "bqk,bkd->bqd"}> : () -> ()
    %cst_31 = arith.constant dense<0.000000e+00> : vector<1x8x8xf32>
    %85 = tpu.matmul %84, %71, %cst_31 {dimension_numbers = #tpu.dot_dimension_numbers<[2], [1], [1], [2], [0, 0, 0, 1, 1, 2], [0], [0]>} : vector<1x8x8xbf16>, vector<1x8x8xbf16>, vector<1x8x8xf32> -> vector<1x8x8xf32>
    "tpu.trace_stop"() : () -> ()
    %86 = vector.shape_cast %85 : vector<1x8x8xf32> to vector<8x8xf32>
    %c0_32 = arith.constant 0 : index
    %c8 = arith.constant 8 : index
    %87 = vector.load %arg17[%c0_32, %c8] : memref<8x32xf32, #tpu.memory_space<vmem>>, vector<8x8xf32>
    tpu.vector_store %arg17[%c0_32, %c8], %86 {strides = array<i32>} : memref<8x32xf32, #tpu.memory_space<vmem>>, vector<8x8xf32>,
    %88 = vector.extract_strided_slice %42 {offsets = [0, 0, 16], sizes = [1, 8, 8], strides = [1, 1, 1]} : vector<1x8x96xf32> to vector<1x8x8xf32>
    %89 = arith.truncf %88 : vector<1x8x8xf32> to vector<1x8x8xbf16>
    %90 = vector.extract_strided_slice %42 {offsets = [0, 0, 48], sizes = [1, 8, 8], strides = [1, 1, 1]} : vector<1x8x96xf32> to vector<1x8x8xf32>
    %91 = arith.truncf %90 : vector<1x8x8xf32> to vector<1x8x8xbf16>
    %92 = vector.extract_strided_slice %42 {offsets = [0, 0, 80], sizes = [1, 8, 8], strides = [1, 1, 1]} : vector<1x8x96xf32> to vector<1x8x8xf32>
    %93 = arith.truncf %92 : vector<1x8x8xf32> to vector<1x8x8xbf16>
    "tpu.trace_start"() <{level = 10 : i32, message = "bqd,bkd->bqk"}> : () -> ()
    %cst_33 = arith.constant dense<0.000000e+00> : vector<1x8x8xf32>
    %94 = tpu.matmul %89, %91, %cst_33 {dimension_numbers = #tpu.dot_dimension_numbers<[2], [2], [1], [1], [0, 0, 0, 1, 1, 1], [0], [0]>} : vector<1x8x8xbf16>, vector<1x8x8xbf16>, vector<1x8x8xf32> -> vector<1x8x8xf32>
    "tpu.trace_stop"() : () -> ()
    %cst_34 = arith.constant dense<0xFF800000> : vector<1x8xf32>
    %95 = vector.multi_reduction <maximumf>, %94, %cst_34 [2] : vector<1x8x8xf32> to vector<1x8xf32>
    %96 = vector.shape_cast %95 : vector<1x8xf32> to vector<1x8x1xf32>
    %97 = vector.broadcast %96 : vector<1x8x1xf32> to vector<1x8x8xf32>
    %98 = arith.subf %94, %97 : vector<1x8x8xf32>
    %99 = math.exp %98 : vector<1x8x8xf32>
    %cst_35 = arith.constant dense<0.000000e+00> : vector<1x8xf32>
    %100 = vector.multi_reduction <add>, %99, %cst_35 [2] : vector<1x8x8xf32> to vector<1x8xf32>
    %101 = vector.shape_cast %100 : vector<1x8xf32> to vector<1x8x1xf32>
    %102 = tpu.reciprocal %101 {approx = true} : vector<1x8x1xf32> -> vector<1x8x1xf32>
    %103 = vector.broadcast %102 : vector<1x8x1xf32> to vector<1x8x8xf32>
    %104 = arith.mulf %99, %103 : vector<1x8x8xf32>
    %105 = arith.addf %83, %104 : vector<1x8x8xf32>
    %106 = arith.truncf %104 : vector<1x8x8xf32> to vector<1x8x8xbf16>
    "tpu.trace_start"() <{level = 10 : i32, message = "bqk,bkd->bqd"}> : () -> ()
    %cst_36 = arith.constant dense<0.000000e+00> : vector<1x8x8xf32>
    %107 = tpu.matmul %106, %93, %cst_36 {dimension_numbers = #tpu.dot_dimension_numbers<[2], [1], [1], [2], [0, 0, 0, 1, 1, 2], [0], [0]>} : vector<1x8x8xbf16>, vector<1x8x8xbf16>, vector<1x8x8xf32> -> vector<1x8x8xf32>
    "tpu.trace_stop"() : () -> ()
    %108 = vector.shape_cast %107 : vector<1x8x8xf32> to vector<8x8xf32>
    %c0_37 = arith.constant 0 : index
    %c16 = arith.constant 16 : index
    %109 = vector.load %arg17[%c0_37, %c16] : memref<8x32xf32, #tpu.memory_space<vmem>>, vector<8x8xf32>
    tpu.vector_store %arg17[%c0_37, %c16], %108 {strides = array<i32>} : memref<8x32xf32, #tpu.memory_space<vmem>>, vector<8x8xf32>,
    %110 = vector.extract_strided_slice %42 {offsets = [0, 0, 24], sizes = [1, 8, 8], strides = [1, 1, 1]} : vector<1x8x96xf32> to vector<1x8x8xf32>
    %111 = arith.truncf %110 : vector<1x8x8xf32> to vector<1x8x8xbf16>
    %112 = vector.extract_strided_slice %42 {offsets = [0, 0, 56], sizes = [1, 8, 8], strides = [1, 1, 1]} : vector<1x8x96xf32> to vector<1x8x8xf32>
    %113 = arith.truncf %112 : vector<1x8x8xf32> to vector<1x8x8xbf16>
    %114 = vector.extract_strided_slice %42 {offsets = [0, 0, 88], sizes = [1, 8, 8], strides = [1, 1, 1]} : vector<1x8x96xf32> to vector<1x8x8xf32>
    %115 = arith.truncf %114 : vector<1x8x8xf32> to vector<1x8x8xbf16>
    "tpu.trace_start"() <{level = 10 : i32, message = "bqd,bkd->bqk"}> : () -> ()
    %cst_38 = arith.constant dense<0.000000e+00> : vector<1x8x8xf32>
    %116 = tpu.matmul %111, %113, %cst_38 {dimension_numbers = #tpu.dot_dimension_numbers<[2], [2], [1], [1], [0, 0, 0, 1, 1, 1], [0], [0]>} : vector<1x8x8xbf16>, vector<1x8x8xbf16>, vector<1x8x8xf32> -> vector<1x8x8xf32>
    "tpu.trace_stop"() : () -> ()
    %cst_39 = arith.constant dense<0xFF800000> : vector<1x8xf32>
    %117 = vector.multi_reduction <maximumf>, %116, %cst_39 [2] : vector<1x8x8xf32> to vector<1x8xf32>
    %118 = vector.shape_cast %117 : vector<1x8xf32> to vector<1x8x1xf32>
    %119 = vector.broadcast %118 : vector<1x8x1xf32> to vector<1x8x8xf32>
    %120 = arith.subf %116, %119 : vector<1x8x8xf32>
    %121 = math.exp %120 : vector<1x8x8xf32>
    %cst_40 = arith.constant dense<0.000000e+00> : vector<1x8xf32>
    %122 = vector.multi_reduction <add>, %121, %cst_40 [2] : vector<1x8x8xf32> to vector<1x8xf32>
    %123 = vector.shape_cast %122 : vector<1x8xf32> to vector<1x8x1xf32>
    %124 = tpu.reciprocal %123 {approx = true} : vector<1x8x1xf32> -> vector<1x8x1xf32>
    %125 = vector.broadcast %124 : vector<1x8x1xf32> to vector<1x8x8xf32>
    %126 = arith.mulf %121, %125 : vector<1x8x8xf32>
    %127 = arith.addf %105, %126 : vector<1x8x8xf32>
    %128 = arith.truncf %126 : vector<1x8x8xf32> to vector<1x8x8xbf16>
    "tpu.trace_start"() <{level = 10 : i32, message = "bqk,bkd->bqd"}> : () -> ()
    %cst_41 = arith.constant dense<0.000000e+00> : vector<1x8x8xf32>
    %129 = tpu.matmul %128, %115, %cst_41 {dimension_numbers = #tpu.dot_dimension_numbers<[2], [1], [1], [2], [0, 0, 0, 1, 1, 2], [0], [0]>} : vector<1x8x8xbf16>, vector<1x8x8xbf16>, vector<1x8x8xf32> -> vector<1x8x8xf32>
    "tpu.trace_stop"() : () -> ()
    %130 = vector.shape_cast %129 : vector<1x8x8xf32> to vector<8x8xf32>
    %c0_42 = arith.constant 0 : index
    %c24 = arith.constant 24 : index
    %131 = vector.load %arg17[%c0_42, %c24] : memref<8x32xf32, #tpu.memory_space<vmem>>, vector<8x8xf32>
    tpu.vector_store %arg17[%c0_42, %c24], %130 {strides = array<i32>} : memref<8x32xf32, #tpu.memory_space<vmem>>, vector<8x8xf32>,
    %c0_43 = arith.constant 0 : index
    %c0_44 = arith.constant 0 : index
    %132 = vector.load %arg17[%c0_43, %c0_44] : memref<8x32xf32, #tpu.memory_space<vmem>>, vector<8x32xf32>
    %133 = arith.truncf %132 : vector<8x32xf32> to vector<8x32xbf16>
    %c0_45 = arith.constant 0 : index
    %c0_46 = arith.constant 0 : index
    %134 = vector.load %arg9[%c0_45, %c0_46] : memref<32x32xbf16, #tpu.memory_space<vmem>>, vector<32x32xbf16>
    %cst_47 = arith.constant dense<0.000000e+00> : vector<8x32xf32>
    %135 = tpu.matmul %133, %134, %cst_47 {dimension_numbers = #tpu.dot_dimension_numbers<[1], [0], [0], [1], [0, 0, 1, 1], [], []>} : vector<8x32xbf16>, vector<32x32xbf16>, vector<8x32xf32> -> vector<8x32xf32>
    %c0_48 = arith.constant 0 : index
    %c0_49 = arith.constant 0 : index
    %136 = vector.load %arg10[%c0_48, %c0_49] : memref<1x32xf32, #tpu.memory_space<vmem>>, vector<1x32xf32>
    %137 = vector.shape_cast %136 : vector<1x32xf32> to vector<32xf32>
    %138 = vector.shape_cast %137 : vector<32xf32> to vector<1x32xf32>
    %139 = vector.broadcast %138 : vector<1x32xf32> to vector<8x32xf32>
    %140 = arith.addf %135, %139 : vector<8x32xf32>
    %cst_50 = arith.constant dense<0.000000e+00> : vector<8xf32>
    %141 = vector.multi_reduction <add>, %140, %cst_50 [1] : vector<8x32xf32> to vector<8xf32>
    %142 = vector.shape_cast %141 : vector<8xf32> to vector<8x1xf32>
    %cst_51 = arith.constant 3.200000e+01 : f32
    %143 = vector.broadcast %cst_51 : f32 to vector<8x1xf32>
    %144 = arith.divf %142, %143 : vector<8x1xf32>
    %145 = vector.broadcast %144 : vector<8x1xf32> to vector<8x32xf32>
    %146 = arith.subf %140, %145 : vector<8x32xf32>
    %147 = arith.mulf %146, %146 : vector<8x32xf32>
    %cst_52 = arith.constant dense<0.000000e+00> : vector<8xf32>
    %148 = vector.multi_reduction <add>, %147, %cst_52 [1] : vector<8x32xf32> to vector<8xf32>
    %149 = vector.shape_cast %148 : vector<8xf32> to vector<8x1xf32>
    %cst_53 = arith.constant 3.200000e+01 : f32
    %150 = vector.broadcast %cst_53 : f32 to vector<8x1xf32>
    %151 = arith.divf %149, %150 : vector<8x1xf32>
    %152 = vector.broadcast %144 : vector<8x1xf32> to vector<8x32xf32>
    %153 = arith.subf %140, %152 : vector<8x32xf32>
    %cst_54 = arith.constant 9.99999974E-6 : f32
    %154 = vector.broadcast %cst_54 : f32 to vector<8x1xf32>
    %155 = arith.addf %151, %154 : vector<8x1xf32>
    %156 = math.rsqrt %155 : vector<8x1xf32>
    %157 = vector.broadcast %156 : vector<8x1xf32> to vector<8x32xf32>
    %158 = arith.mulf %153, %157 : vector<8x32xf32>
    %159 = vector.shape_cast %7 : vector<32xf32> to vector<1x32xf32>
    %160 = vector.broadcast %159 : vector<1x32xf32> to vector<8x32xf32>
    %161 = arith.mulf %158, %160 : vector<8x32xf32>
    %162 = vector.shape_cast %9 : vector<32xf32> to vector<1x32xf32>
    %163 = vector.broadcast %162 : vector<1x32xf32> to vector<8x32xf32>
    %164 = arith.addf %161, %163 : vector<8x32xf32>
    %165 = vector.shape_cast %11 : vector<32xf32> to vector<1x32xf32>
    %166 = vector.broadcast %165 : vector<1x32xf32> to vector<8x32xf32>
    %167 = arith.mulf %166, %164 : vector<8x32xf32>
    %168 = arith.addf %1, %167 : vector<8x32xf32>
    %cst_55 = arith.constant dense<0.000000e+00> : vector<8xf32>
    %169 = vector.multi_reduction <add>, %168, %cst_55 [1] : vector<8x32xf32> to vector<8xf32>
    %170 = vector.shape_cast %169 : vector<8xf32> to vector<8x1xf32>
    %cst_56 = arith.constant 3.200000e+01 : f32
    %171 = vector.broadcast %cst_56 : f32 to vector<8x1xf32>
    %172 = arith.divf %170, %171 : vector<8x1xf32>
    %173 = vector.broadcast %172 : vector<8x1xf32> to vector<8x32xf32>
    %174 = arith.subf %168, %173 : vector<8x32xf32>
    %175 = arith.mulf %174, %174 : vector<8x32xf32>
    %cst_57 = arith.constant dense<0.000000e+00> : vector<8xf32>
    %176 = vector.multi_reduction <add>, %175, %cst_57 [1] : vector<8x32xf32> to vector<8xf32>
    %177 = vector.shape_cast %176 : vector<8xf32> to vector<8x1xf32>
    %cst_58 = arith.constant 3.200000e+01 : f32
    %178 = vector.broadcast %cst_58 : f32 to vector<8x1xf32>
    %179 = arith.divf %177, %178 : vector<8x1xf32>
    %180 = vector.broadcast %172 : vector<8x1xf32> to vector<8x32xf32>
    %181 = arith.subf %168, %180 : vector<8x32xf32>
    %cst_59 = arith.constant 9.99999974E-6 : f32
    %182 = vector.broadcast %cst_59 : f32 to vector<8x1xf32>
    %183 = arith.addf %179, %182 : vector<8x1xf32>
    %184 = math.rsqrt %183 : vector<8x1xf32>
    %185 = vector.broadcast %184 : vector<8x1xf32> to vector<8x32xf32>
    %186 = arith.mulf %181, %185 : vector<8x32xf32>
    %187 = vector.shape_cast %3 : vector<32xf32> to vector<1x32xf32>
    %188 = vector.broadcast %187 : vector<1x32xf32> to vector<8x32xf32>
    %189 = arith.mulf %186, %188 : vector<8x32xf32>
    %190 = vector.shape_cast %5 : vector<32xf32> to vector<1x32xf32>
    %191 = vector.broadcast %190 : vector<1x32xf32> to vector<8x32xf32>
    %192 = arith.addf %189, %191 : vector<8x32xf32>
    %193 = arith.truncf %192 : vector<8x32xf32> to vector<8x32xbf16>
    %c0_60 = arith.constant 0 : index
    %c0_61 = arith.constant 0 : index
    %194 = vector.load %arg11[%c0_60, %c0_61] : memref<32x64xbf16, #tpu.memory_space<vmem>>, vector<32x64xbf16>
    %cst_62 = arith.constant dense<0.000000e+00> : vector<8x64xf32>
    %195 = tpu.matmul %193, %194, %cst_62 {dimension_numbers = #tpu.dot_dimension_numbers<[1], [0], [0], [1], [0, 0, 1, 1], [], []>} : vector<8x32xbf16>, vector<32x64xbf16>, vector<8x64xf32> -> vector<8x64xf32>
    %c0_63 = arith.constant 0 : index
    %c0_64 = arith.constant 0 : index
    %196 = vector.load %arg12[%c0_63, %c0_64] : memref<1x64xf32, #tpu.memory_space<vmem>>, vector<1x64xf32>
    %197 = vector.shape_cast %196 : vector<1x64xf32> to vector<64xf32>
    %198 = vector.shape_cast %197 : vector<64xf32> to vector<1x64xf32>
    %199 = vector.broadcast %198 : vector<1x64xf32> to vector<8x64xf32>
    %200 = arith.addf %195, %199 : vector<8x64xf32>
    %cst_65 = arith.constant 0.000000e+00 : f32
    %201 = vector.broadcast %cst_65 : f32 to vector<8x64xf32>
    %202 = arith.maximumf %200, %201 : vector<8x64xf32>
    %203 = arith.truncf %202 : vector<8x64xf32> to vector<8x64xbf16>
    %c0_66 = arith.constant 0 : index
    %c0_67 = arith.constant 0 : index
    %204 = vector.load %arg13[%c0_66, %c0_67] : memref<64x32xbf16, #tpu.memory_space<vmem>>, vector<64x32xbf16>
    %cst_68 = arith.constant dense<0.000000e+00> : vector<8x32xf32>
    %205 = tpu.matmul %203, %204, %cst_68 {dimension_numbers = #tpu.dot_dimension_numbers<[1], [0], [0], [1], [0, 0, 1, 1], [], []>} : vector<8x64xbf16>, vector<64x32xbf16>, vector<8x32xf32> -> vector<8x32xf32>
    %c0_69 = arith.constant 0 : index
    %c0_70 = arith.constant 0 : index
    %206 = vector.load %arg14[%c0_69, %c0_70] : memref<1x32xf32, #tpu.memory_space<vmem>>, vector<1x32xf32>
    %207 = vector.shape_cast %206 : vector<1x32xf32> to vector<32xf32>
    %208 = vector.shape_cast %207 : vector<32xf32> to vector<1x32xf32>
    %209 = vector.broadcast %208 : vector<1x32xf32> to vector<8x32xf32>
    %210 = arith.addf %205, %209 : vector<8x32xf32>
    %cst_71 = arith.constant dense<0.000000e+00> : vector<8xf32>
    %211 = vector.multi_reduction <add>, %210, %cst_71 [1] : vector<8x32xf32> to vector<8xf32>
    %212 = vector.shape_cast %211 : vector<8xf32> to vector<8x1xf32>
    %cst_72 = arith.constant 3.200000e+01 : f32
    %213 = vector.broadcast %cst_72 : f32 to vector<8x1xf32>
    %214 = arith.divf %212, %213 : vector<8x1xf32>
    %215 = vector.broadcast %214 : vector<8x1xf32> to vector<8x32xf32>
    %216 = arith.subf %210, %215 : vector<8x32xf32>
    %217 = arith.mulf %216, %216 : vector<8x32xf32>
    %cst_73 = arith.constant dense<0.000000e+00> : vector<8xf32>
    %218 = vector.multi_reduction <add>, %217, %cst_73 [1] : vector<8x32xf32> to vector<8xf32>
    %219 = vector.shape_cast %218 : vector<8xf32> to vector<8x1xf32>
    %cst_74 = arith.constant 3.200000e+01 : f32
    %220 = vector.broadcast %cst_74 : f32 to vector<8x1xf32>
    %221 = arith.divf %219, %220 : vector<8x1xf32>
    %222 = vector.broadcast %214 : vector<8x1xf32> to vector<8x32xf32>
    %223 = arith.subf %210, %222 : vector<8x32xf32>
    %cst_75 = arith.constant 9.99999974E-6 : f32
    %224 = vector.broadcast %cst_75 : f32 to vector<8x1xf32>
    %225 = arith.addf %221, %224 : vector<8x1xf32>
    %226 = math.rsqrt %225 : vector<8x1xf32>
    %227 = vector.broadcast %226 : vector<8x1xf32> to vector<8x32xf32>
    %228 = arith.mulf %223, %227 : vector<8x32xf32>
    %229 = vector.shape_cast %7 : vector<32xf32> to vector<1x32xf32>
    %230 = vector.broadcast %229 : vector<1x32xf32> to vector<8x32xf32>
    %231 = arith.mulf %228, %230 : vector<8x32xf32>
    %232 = vector.shape_cast %9 : vector<32xf32> to vector<1x32xf32>
    %233 = vector.broadcast %232 : vector<1x32xf32> to vector<8x32xf32>
    %234 = arith.addf %231, %233 : vector<8x32xf32>
    %235 = vector.shape_cast %11 : vector<32xf32> to vector<1x32xf32>
    %236 = vector.broadcast %235 : vector<1x32xf32> to vector<8x32xf32>
    %237 = arith.mulf %236, %234 : vector<8x32xf32>
    %238 = arith.addf %168, %237 : vector<8x32xf32>
    %239 = vector.shape_cast %238 : vector<8x32xf32> to vector<1x8x32xf32>
    %c0_76 = arith.constant 0 : index
    %c0_77 = arith.constant 0 : index
    %c0_78 = arith.constant 0 : index
    %240 = vector.load %arg15[%c0_76, %c0_77, %c0_78] : memref<1x8x32xf32, #tpu.memory_space<vmem>>, vector<1x8x32xf32>
    tpu.vector_store %arg15[%c0_76, %c0_77, %c0_78], %239 {strides = array<i32>} : memref<1x8x32xf32, #tpu.memory_space<vmem>>, vector<1x8x32xf32>,
    %cst_79 = arith.constant 2.500000e-01 : f32
    %241 = vector.broadcast %cst_79 : f32 to vector<1x8x8xf32>
    %242 = arith.mulf %127, %241 : vector<1x8x8xf32>
    %c0_80 = arith.constant 0 : index
    %c0_81 = arith.constant 0 : index
    %c0_82 = arith.constant 0 : index
    %243 = vector.load %arg16[%c0_80, %c0_81, %c0_82] : memref<1x8x8xf32, #tpu.memory_space<vmem>>, vector<1x8x8xf32>
    tpu.vector_store %arg16[%c0_80, %c0_81, %c0_82], %242 {strides = array<i32>} : memref<1x8x8xf32, #tpu.memory_space<vmem>>, vector<1x8x8xf32>,
    return
  }
  func.func @transform_0(%arg0: i32) -> (i32, i32, i32) {
    %c0_i32 = arith.constant 0 : i32
    %c0_i32_0 = arith.constant 0 : i32
    %c0_i32_1 = arith.constant 0 : i32
    return %arg0, %c0_i32, %c0_i32_0 : i32, i32, i32
  }
  func.func @transform_1(%arg0: i32) -> (i32, i32) {
    %c0_i32 = arith.constant 0 : i32
    %c0_i32_0 = arith.constant 0 : i32
    %c0_i32_1 = arith.constant 0 : i32
    return %c0_i32, %c0_i32_0 : i32, i32
  }
  func.func @transform_2(%arg0: i32) -> (i32, i32) {
    %c0_i32 = arith.constant 0 : i32
    %c0_i32_0 = arith.constant 0 : i32
    %c0_i32_1 = arith.constant 0 : i32
    return %c0_i32, %c0_i32_0 : i32, i32
  }
  func.func @transform_3(%arg0: i32) -> (i32, i32) {
    %c0_i32 = arith.constant 0 : i32
    %c0_i32_0 = arith.constant 0 : i32
    %c0_i32_1 = arith.constant 0 : i32
    return %c0_i32, %c0_i32_0 : i32, i32
  }
  func.func @transform_4(%arg0: i32) -> (i32, i32) {
    %c0_i32 = arith.constant 0 : i32
    %c0_i32_0 = arith.constant 0 : i32
    %c0_i32_1 = arith.constant 0 : i32
    return %c0_i32, %c0_i32_0 : i32, i32
  }
  func.func @transform_5(%arg0: i32) -> (i32, i32) {
    %c0_i32 = arith.constant 0 : i32
    %c0_i32_0 = arith.constant 0 : i32
    %c0_i32_1 = arith.constant 0 : i32
    return %c0_i32, %c0_i32_0 : i32, i32
  }
  func.func @transform_6(%arg0: i32) -> (i32, i32) {
    %c0_i32 = arith.constant 0 : i32
    %c0_i32_0 = arith.constant 0 : i32
    %c0_i32_1 = arith.constant 0 : i32
    return %c0_i32, %c0_i32_0 : i32, i32
  }
  func.func @transform_7(%arg0: i32) -> (i32, i32) {
    %c0_i32 = arith.constant 0 : i32
    %c0_i32_0 = arith.constant 0 : i32
    %c0_i32_1 = arith.constant 0 : i32
    return %c0_i32, %c0_i32_0 : i32, i32
  }
  func.func @transform_8(%arg0: i32) -> (i32, i32) {
    %c0_i32 = arith.constant 0 : i32
    %c0_i32_0 = arith.constant 0 : i32
    %c0_i32_1 = arith.constant 0 : i32
    return %c0_i32, %c0_i32_0 : i32, i32
  }
  func.func @transform_9(%arg0: i32) -> (i32, i32) {
    %c0_i32 = arith.constant 0 : i32
    %c0_i32_0 = arith.constant 0 : i32
    %c0_i32_1 = arith.constant 0 : i32
    return %c0_i32, %c0_i32_0 : i32, i32
  }
  func.func @transform_10(%arg0: i32) -> (i32, i32) {
    %c0_i32 = arith.constant 0 : i32
    %c0_i32_0 = arith.constant 0 : i32
    %c0_i32_1 = arith.constant 0 : i32
    return %c0_i32, %c0_i32_0 : i32, i32
  }
  func.func @transform_11(%arg0: i32) -> (i32, i32) {
    %c0_i32 = arith.constant 0 : i32
    %c0_i32_0 = arith.constant 0 : i32
    %c0_i32_1 = arith.constant 0 : i32
    return %c0_i32, %c0_i32_0 : i32, i32
  }
  func.func @transform_12(%arg0: i32) -> (i32, i32) {
    %c0_i32 = arith.constant 0 : i32
    %c0_i32_0 = arith.constant 0 : i32
    %c0_i32_1 = arith.constant 0 : i32
    return %c0_i32, %c0_i32_0 : i32, i32
  }
  func.func @transform_13(%arg0: i32) -> (i32, i32) {
    %c0_i32 = arith.constant 0 : i32
    %c0_i32_0 = arith.constant 0 : i32
    %c0_i32_1 = arith.constant 0 : i32
    return %c0_i32, %c0_i32_0 : i32, i32
  }
  func.func @transform_14(%arg0: i32) -> (i32, i32, i32) {
    %c0_i32 = arith.constant 0 : i32
    %c0_i32_0 = arith.constant 0 : i32
    %c0_i32_1 = arith.constant 0 : i32
    return %arg0, %c0_i32, %c0_i32_0 : i32, i32, i32
  }
  func.func @transform_15(%arg0: i32) -> (i32, i32, i32) {
    %c0_i32 = arith.constant 0 : i32
    %c0_i32_0 = arith.constant 0 : i32
    %c0_i32_1 = arith.constant 0 : i32
    return %arg0, %c0_i32, %c0_i32_0 : i32, i32, i32
  }
}

</mosaic_0001>

<bundles_post_ra>
// kernel: tpu_custom_call.1
= control target key start
LH: loop header
LB: loop body
LE: loop exit
PB: predicated region body
PF: predicated region fallthrough
CT: control target
= control target key end

     0   :  { %s3521_s0 = inlined_call_operand.hbm [shape: f32[2,8,32], index: 0, kind: input, shape index: {}]   ;;  %s3522_s1 = inlined_call_operand.hbm [shape: f32[8,96], index: 1, kind: input, shape index: {}]   ;;  %s3523_s2 = inlined_call_operand.hbm [shape: f32[1,32], index: 2, kind: input, shape index: {}]   ;;  %s3524_s3 = inlined_call_operand.hbm [shape: f32[1,32], index: 3, kind: input, shape index: {}]   ;;  %s3525_s4 = inlined_call_operand.hbm [shape: f32[1,32], index: 4, kind: input, shape index: {}]   ;;  %s3526_s5 = inlined_call_operand.hbm [shape: f32[1,32], index: 5, kind: input, shape index: {}]   ;;  %s3527_s6 = inlined_call_operand.hbm [shape: f32[1,32], index: 6, kind: input, shape index: {}]   ;;  %s3528_s7 = inlined_call_operand.hbm [shape: bf16[32,96], index: 7, kind: input, shape index: {}]   ;;  %s3529_s8 = inlined_call_operand.hbm [shape: bf16[32,32], index: 8, kind: input, shape index: {}]   ;;  %s3530_s9 = inlined_call_operand.hbm [shape: f32[1,32], index: 9, kind: input, shape index: {}]   ;;  %s3531_s10 = inlined_call_operand.hbm [shape: bf16[32,64], index: 10, kind: input, shape index: {}]   ;;  %s3532_s11 = inlined_call_operand.hbm [shape: f32[1,64], index: 11, kind: input, shape index: {}]   ;;  %s3533_s12 = inlined_call_operand.hbm [shape: bf16[64,32], index: 12, kind: input, shape index: {}]   ;;  %s3534_s13 = inlined_call_operand.hbm [shape: f32[1,32], index: 13, kind: input, shape index: {}]   ;;  %s3535_s14 = inlined_call_operand.hbm [shape: f32[2,8,32], index: 14, kind: output, shape index: {0}]   ;;  %s3536_s15 = inlined_call_operand.hbm [shape: f32[2,8,8], index: 15, kind: output, shape index: {1}]  }
   0x1   :  { %3548 = sst [smem:[#allocation42_spill]] %s3521_s0 }
   0x2   :  { %3549 = sst [smem:[#allocation43_spill]] %s3522_s1 }
   0x3   :  { %3550 = sst [smem:[#allocation44_spill]] %s3523_s2 }
   0x4   :  { %3551 = sst [smem:[#allocation45_spill]] %s3524_s3 }
   0x5   :  { %3552 = sst [smem:[#allocation46_spill]] %s3525_s4 }
   0x6   :  { %3553 = sst [smem:[#allocation47_spill]] %s3526_s5 }
   0x7   :  { %3554 = sst [smem:[#allocation48_spill]] %s3535_s14 }
   0x8   :  { %3555 = sst [smem:[#allocation49_spill]] %s3536_s15 }
   0x9   :  { %21 = vsyncpa [#allocation4], 0 }
   0xa   :  { %23 = vsyncpa [#allocation4 + $0x1], 0 }
   0xb   :  { %24 = vsyncpa [#allocation7], 0 }
   0xc   :  { %25 = vsyncpa [#allocation10], 0 }
   0xd   :  { %26 = vsyncpa [#allocation13], 0 }
   0xe   :  { %27 = vsyncpa [#allocation16], 0 }
   0xf   :  { %28 = vsyncpa [#allocation19], 0 }
  0x10   :  { %29 = vsyncpa [#allocation22], 0 }
  0x11   :  { %30 = vsyncpa [#allocation25], 0 }
  0x12   :  { %31 = vsyncpa [#allocation5], 0 }
  0x13   :  { %33 = vsyncpa [#allocation5 + $0x1], 0 }
  0x14   :  { %34 = vsyncpa [#allocation28], 0 }
  0x15   :  { %36 = vsyncpa [#allocation28 + $0x1], 0  ;;  %s2858_s18 = smov 0   ;;  %s2860_s19 = smov 0  }
  0x16   :  { %s2862_s20 = smov 0   ;;  %s2864_s21 = smov 0  }
  0x17 LB: > { %3556 = sst [smem:[#allocation39_spill]] %s2730_s18  ;;  %s2744_s22 = smov [#allocation6]   ;;  %s2742_s21 = sphi %s2864_s21, %s3603_s21   ;;  %s2738_s20 = sphi %s2862_s20, %s3602_s20   ;;  %s2734_s19 = sphi %s2860_s19, %s3601_s19   ;;  %s2730_s18 = sphi %s2858_s18, %s3600_s18  }
  0x18   : > { %s411_s23 = sshll.u32 %s2744_s22, 4  ;;  %s2879_s24 = sadd.s32 4294967295, %s2742_s21   ;;  %s2884_s23 = int_to_ptr.vmem [resolvable:$true] %s411_s23 }
  0x19   : > { %3557 = sst [smem:[#allocation40_spill]] %s2879_s24  ;;  %p1804_p0 = scmp.ge.s32.totalorder %s2742_s21, 1 }
  0x1a   : > { %p3544_p1 = scmp.eq.s32.totalorder %s2879_s24, 0  ;;  %p398_p2 = scmp.lt.s32.totalorder %s2742_s21, 3 }
  0x1b   : > { %s2745_s26 = smov [#allocation9]   ;;  %s2746_s28 = smov [#allocation12]  }
  0x1c   : > { %p2886_p3 = pnand %p1804_p0, %p398_p2  ;;  %s433_s27 = sshll.u32 %s2745_s26, 4  ;;  %s2893_s27 = int_to_ptr.vmem [resolvable:$true] %s433_s27 }
  0x1d   : > { %s455_s29 = sshll.u32 %s2746_s28, 4  ;;  %s2747_s16 = smov [#allocation15]   ;;  %s2901_s29 = int_to_ptr.vmem [resolvable:$true] %s455_s29 }
  0x1e   : > { %s3558_s25 = scalar_select %p2886_p3, 1, 0 }
  0x1f   : > { %p2046_p5 = pneg %p2886_p3  ;;  %s2903_s17 = sshll.u32 %s2747_s16, 4  ;;  %s477_s17 = int_to_ptr.vmem [resolvable:$true] %s2903_s17 }
  0x20   : > { %3559 = sst [smem:[#allocation41_spill]] %s3558_s25  ;;  %s3561_s1 = sld [smem:[#allocation43_spill]] }
  0x21   : > { %p2897_p6 = pnand %p2046_p5, %p3544_p1 }
  0x23   : > { %p2913_p8 = pneg %p2897_p6 }
  0x26   : > { %s2222_s15 = scalar_lea.hbm %s3561_s1, 128 }
  0x27   : > { %p2223_p7 = scmp.ne.s32.totalorder %s3561_s1, %s2222_s15  ;;  %p2229_p11 = scmp.lt.u32.totalorder %s2222_s15, %s3561_s1 }
  0x29   : > { %p2225_p9 = pnand %p2913_p8, %p2223_p7 }
  0x2b   : > { %p2226_p10 = pneg %p2225_p9 }
  0x2d   : > { %p2231_p12 = pnand %p2229_p11, %p2226_p10 }
  0x2f   : > { %2234 = shalt.err (!%p2231_p12)
}
  0x30   : > { %s2235_s14 = scalar_lea.vmem %s2884_s23, 128  ;;  %p2243_p5 = scmp.lt.s32.totalorder %s2884_s23, %s2884_s23 }
  0x31   : > { %p2236_p13 = scmp.ne.s32.totalorder %s2884_s23, %s2235_s14  ;;  %p2244_p4 = scmp.lt.s32.totalorder %s2235_s14, %s2235_s14 }
  0x33   : > { %p2238_p0 = pnand %p2236_p13, %p2913_p8  ;;  %p2245_p7 = por %p2244_p4, %p2243_p5 }
  0x35   : > { %p2239_p2 = pneg %p2238_p0 }
  0x37   : > { %p2246_p9 = pnand %p2245_p7, %p2239_p2 }
  0x39   : > { %2249 = shalt.err (!%p2246_p9)
}
  0x3a   : > { %2049 = dma.hbm_to_vmem [thread:$0]  (!%p2897_p6), %s3561_s1, 128, %s2884_s23, [#allocation7]  }
  0x3b   : > { %s3563_s3 = sld [smem:[#allocation45_spill]] }
  0x41   : > { %s2250_s26 = scalar_lea.hbm %s3563_s3, 16 }
  0x42   : > { %p2251_p10 = scmp.ne.s32.totalorder %s3563_s3, %s2250_s26  ;;  %p2257_p12 = scmp.lt.u32.totalorder %s2250_s26, %s3563_s3 }
  0x44   : > { %p2253_p4 = pnand %p2251_p10, %p2913_p8 }
  0x46   : > { %p2254_p11 = pneg %p2253_p4 }
  0x48   : > { %p2259_p13 = pnand %p2257_p12, %p2254_p11 }
  0x4a   : > { %2262 = shalt.err (!%p2259_p13)
}
  0x4b   : > { %s2263_s23 = scalar_lea.vmem %s2893_s27, 16  ;;  %s2270_s24 = scalar_lea.vmem %s2893_s27, 32 }
  0x4c   : > { %p2264_p0 = scmp.ne.s32.totalorder %s2893_s27, %s2263_s23  ;;  %p2271_p7 = scmp.lt.s32.totalorder %s2893_s27, %s2893_s27 }
  0x4d   : > { %p2272_p9 = scmp.lt.s32.totalorder %s2270_s24, %s2263_s23 }
  0x4e   : > { %p2266_p2 = pnand %p2264_p0, %p2913_p8 }
  0x4f   : > { %p2273_p10 = por %p2272_p9, %p2271_p7 }
  0x50   : > { %p2267_p5 = pneg %p2266_p2 }
  0x52   : > { %p2274_p4 = pnand %p2273_p10, %p2267_p5 }
  0x54   : > { %2277 = shalt.err (!%p2274_p4)
}
  0x55   : > { %2055 = dma.hbm_to_vmem [thread:$0]  (!%p2897_p6), %s3563_s3, 16, %s2893_s27, [#allocation10]  }
  0x56   : > { %s3564_s5 = sld [smem:[#allocation47_spill]] }
  0x5c   : > { %s2278_s22 = scalar_lea.hbm %s3564_s5, 16 }
  0x5d   : > { %p2279_p11 = scmp.ne.s32.totalorder %s3564_s5, %s2278_s22  ;;  %p2285_p0 = scmp.lt.u32.totalorder %s2278_s22, %s3564_s5 }
  0x5f   : > { %p2281_p12 = pnand %p2279_p11, %p2913_p8 }
  0x61   : > { %p2282_p13 = pneg %p2281_p12 }
  0x63   : > { %p2287_p2 = pnand %p2285_p0, %p2282_p13 }
  0x65   : > { %2290 = shalt.err (!%p2287_p2)
}
  0x66   : > { %s2291_s27 = scalar_lea.vmem %s2901_s29, 16  ;;  %s2298_s24 = scalar_lea.vmem %s2901_s29, 32 }
  0x67   : > { %p2292_p5 = scmp.ne.s32.totalorder %s2901_s29, %s2291_s27  ;;  %p2299_p10 = scmp.lt.s32.totalorder %s2901_s29, %s2901_s29 }
  0x68   : > { %p2300_p4 = scmp.lt.s32.totalorder %s2298_s24, %s2291_s27 }
  0x69   : > { %p2294_p7 = pnand %p2292_p5, %p2913_p8 }
  0x6a   : > { %p2301_p11 = por %p2300_p4, %p2299_p10 }
  0x6b   : > { %p2295_p9 = pneg %p2294_p7 }
  0x6d   : > { %p2302_p12 = pnand %p2301_p11, %p2295_p9 }
  0x6f   : > { %2305 = shalt.err (!%p2302_p12)
}
  0x70   : > { %2061 = dma.hbm_to_vmem [thread:$0]  (!%p2897_p6), %s3564_s5, 16, %s2901_s29, [#allocation13]  }
  0x71   : > { %s2306_s22 = scalar_lea.hbm %s3528_s7, 256 }
  0x72   : > { %p2307_p13 = scmp.ne.s32.totalorder %s3528_s7, %s2306_s22  ;;  %p2313_p5 = scmp.lt.u32.totalorder %s2306_s22, %s3528_s7 }
  0x74   : > { %p2309_p0 = pnand %p2307_p13, %p2913_p8 }
  0x76   : > { %p2310_p2 = pneg %p2309_p0 }
  0x78   : > { %p2315_p7 = pnand %p2313_p5, %p2310_p2 }
  0x7a   : > { %2318 = shalt.err (!%p2315_p7)
}
  0x7b   : > { %s2319_s27 = scalar_lea.vmem %s477_s17, 256  ;;  %p2327_p11 = scmp.lt.s32.totalorder %s477_s17, %s477_s17 }
  0x7c   : > { %p2320_p9 = scmp.ne.s32.totalorder %s477_s17, %s2319_s27  ;;  %p2328_p12 = scmp.lt.s32.totalorder %s2319_s27, %s2319_s27 }
  0x7e   : > { %p2322_p10 = pnand %p2320_p9, %p2913_p8  ;;  %p2329_p1 = por %p2328_p12, %p2327_p11 }
  0x80   : > { %p2323_p4 = pneg %p2322_p10 }
  0x82   : > { %p2330_p3 = pnand %p2329_p1, %p2323_p4 }
  0x84   : > { %2333 = shalt.err (!%p2330_p3)
}
  0x85   : > { %s2748_s29 = smov 64   ;;  %s2749_s24 = smov 4  }
  0x86   : > { %2067 = dma.hbm_to_vmem [thread:$0]  (!%p2897_p6), %s3528_s7, 256, %s477_s17, [#allocation16], %s2748_s29, %s2748_s29, %s2749_s24  }
  0x87   : > { %s2750_s15 = smov [#allocation18]   ;;  %s2751_s22 = smov [#allocation21]  }
  0x88   : > { %s503_s25 = sshll.u32 %s2750_s15, 4  ;;  %s527_s26 = sshll.u32 %s2751_s22, 4  ;;  %s504_s25 = int_to_ptr.vmem [resolvable:$true] %s503_s25  ;;  %s3004_s26 = int_to_ptr.vmem [resolvable:$true] %s527_s26 }
  0x89   : > { %s2334_s23 = scalar_lea.hbm %s3530_s9, 16 }
  0x8a   : > { %p2335_p1 = scmp.ne.s32.totalorder %s3530_s9, %s2334_s23  ;;  %p2341_p0 = scmp.lt.u32.totalorder %s2334_s23, %s3530_s9 }
  0x8c   : > { %p2337_p3 = pnand %p2335_p1, %p2913_p8 }
  0x8e   : > { %p2338_p13 = pneg %p2337_p3 }
  0x90   : > { %p2343_p2 = pnand %p2341_p0, %p2338_p13 }
  0x92   : > { %2346 = shalt.err (!%p2343_p2)
}
  0x93   : > { %s2347_s0 = scalar_lea.vmem %s504_s25, 16  ;;  %s2354_s15 = scalar_lea.vmem %s504_s25, 32 }
  0x94   : > { %p2348_p5 = scmp.ne.s32.totalorder %s504_s25, %s2347_s0  ;;  %p2355_p10 = scmp.lt.s32.totalorder %s504_s25, %s504_s25 }
  0x95   : > { %p2356_p4 = scmp.lt.s32.totalorder %s2354_s15, %s2347_s0 }
  0x96   : > { %p2350_p7 = pnand %p2348_p5, %p2913_p8 }
  0x97   : > { %p2357_p11 = por %p2356_p4, %p2355_p10 }
  0x98   : > { %p2351_p9 = pneg %p2350_p7 }
  0x9a   : > { %p2358_p12 = pnand %p2357_p11, %p2351_p9 }
  0x9c   : > { %2361 = shalt.err (!%p2358_p12)
}
  0x9d   : > { %2073 = dma.hbm_to_vmem [thread:$0]  (!%p2897_p6), %s3530_s9, 16, %s504_s25, [#allocation19]  }
  0x9e   : > { %s2362_s23 = scalar_lea.hbm %s3532_s11, 16 }
  0x9f   : > { %p2363_p1 = scmp.ne.s32.totalorder %s3532_s11, %s2362_s23  ;;  %p2369_p0 = scmp.lt.u32.totalorder %s2362_s23, %s3532_s11 }
  0xa1   : > { %p2365_p3 = pnand %p2363_p1, %p2913_p8 }
  0xa3   : > { %p2366_p13 = pneg %p2365_p3 }
  0xa5   : > { %p2371_p2 = pnand %p2369_p0, %p2366_p13 }
  0xa7   : > { %2374 = shalt.err (!%p2371_p2)
}
  0xa8   : > { %s2375_s25 = scalar_lea.vmem %s3004_s26, 16  ;;  %s2382_s15 = scalar_lea.vmem %s3004_s26, 32 }
  0xa9   : > { %p2376_p5 = scmp.ne.s32.totalorder %s3004_s26, %s2375_s25  ;;  %p2383_p10 = scmp.lt.s32.totalorder %s3004_s26, %s3004_s26 }
  0xaa   : > { %p2384_p4 = scmp.lt.s32.totalorder %s2382_s15, %s2375_s25 }
  0xab   : > { %p2378_p7 = pnand %p2376_p5, %p2913_p8 }
  0xac   : > { %p2385_p11 = por %p2384_p4, %p2383_p10 }
  0xad   : > { %p2379_p9 = pneg %p2378_p7 }
  0xaf   : > { %p2386_p12 = pnand %p2385_p11, %p2379_p9 }
  0xb1   : > { %2389 = shalt.err (!%p2386_p12)
}
  0xb2   : > { %2079 = dma.hbm_to_vmem [thread:$0]  (!%p2897_p6), %s3532_s11, 16, %s3004_s26, [#allocation22]  }
  0xb3   : > { %s2752_s16 = smov [#allocation8]   ;;  %s2753_s23 = smov [#allocation11]  }
  0xb4   : > { %s422_s14 = sshll.u32 %s2752_s16, 4  ;;  %s444_s27 = sshll.u32 %s2753_s23, 4  ;;  %s423_s14 = int_to_ptr.vmem [resolvable:$true] %s422_s14  ;;  %s3048_s27 = int_to_ptr.vmem [resolvable:$true] %s444_s27 }
  0xb5   : > { %s3565_s2 = sld [smem:[#allocation44_spill]] }
  0xbb   : > { %s2390_s0 = scalar_lea.hbm %s3565_s2, 16 }
  0xbc   : > { %p2391_p1 = scmp.ne.s32.totalorder %s3565_s2, %s2390_s0  ;;  %p2397_p0 = scmp.lt.u32.totalorder %s2390_s0, %s3565_s2 }
  0xbe   : > { %p2393_p3 = pnand %p2391_p1, %p2913_p8 }
  0xc0   : > { %p2394_p13 = pneg %p2393_p3 }
  0xc2   : > { %p2399_p2 = pnand %p2397_p0, %p2394_p13 }
  0xc4   : > { %2402 = shalt.err (!%p2399_p2)
}
  0xc5   : > { %s2403_s22 = scalar_lea.vmem %s423_s14, 16  ;;  %s2410_s16 = scalar_lea.vmem %s423_s14, 32 }
  0xc6   : > { %p2404_p5 = scmp.ne.s32.totalorder %s423_s14, %s2403_s22  ;;  %p2411_p10 = scmp.lt.s32.totalorder %s423_s14, %s423_s14 }
  0xc7   : > { %p2412_p4 = scmp.lt.s32.totalorder %s2410_s16, %s2403_s22 }
  0xc8   : > { %p2406_p7 = pnand %p2404_p5, %p2913_p8 }
  0xc9   : > { %p2413_p11 = por %p2412_p4, %p2411_p10 }
  0xca   : > { %p2407_p9 = pneg %p2406_p7 }
  0xcc   : > { %p2414_p12 = pnand %p2413_p11, %p2407_p9 }
  0xce   : > { %2417 = shalt.err (!%p2414_p12)
}
  0xcf   : > { %2052 = dma.hbm_to_vmem [thread:$0]  (!%p2897_p6), %s3565_s2, 16, %s423_s14, [#allocation7]  }
  0xd0   : > { %s3566_s4 = sld [smem:[#allocation46_spill]] }
  0xd6   : > { %s2418_s25 = scalar_lea.hbm %s3566_s4, 16 }
  0xd7   : > { %p2419_p1 = scmp.ne.s32.totalorder %s3566_s4, %s2418_s25  ;;  %p2425_p0 = scmp.lt.u32.totalorder %s2418_s25, %s3566_s4 }
  0xd9   : > { %p2421_p3 = pnand %p2419_p1, %p2913_p8 }
  0xdb   : > { %p2422_p13 = pneg %p2421_p3 }
  0xdd   : > { %p2427_p2 = pnand %p2425_p0, %p2422_p13 }
  0xdf   : > { %2430 = shalt.err (!%p2427_p2)
}
  0xe0   : > { %s2431_s14 = scalar_lea.vmem %s3048_s27, 16  ;;  %s2438_s16 = scalar_lea.vmem %s3048_s27, 32 }
  0xe1   : > { %p2432_p5 = scmp.ne.s32.totalorder %s3048_s27, %s2431_s14  ;;  %p2439_p10 = scmp.lt.s32.totalorder %s3048_s27, %s3048_s27 }
  0xe2   : > { %p2440_p4 = scmp.lt.s32.totalorder %s2438_s16, %s2431_s14 }
  0xe3   : > { %p2434_p7 = pnand %p2432_p5, %p2913_p8 }
  0xe4   : > { %p2441_p11 = por %p2440_p4, %p2439_p10 }
  0xe5   : > { %p2435_p9 = pneg %p2434_p7 }
  0xe7   : > { %p2442_p12 = pnand %p2441_p11, %p2435_p9 }
  0xe9   : > { %2445 = shalt.err (!%p2442_p12)
}
  0xea   : > { %2058 = dma.hbm_to_vmem [thread:$0]  (!%p2897_p6), %s3566_s4, 16, %s3048_s27, [#allocation10]  }
  0xeb   : > { %s2754_s17 = smov [#allocation14]   ;;  %s2755_s25 = smov [#allocation17]  }
  0xec   : > { %s466_s0 = sshll.u32 %s2754_s17, 4  ;;  %s489_s15 = sshll.u32 %s2755_s25, 4  ;;  %s467_s0 = int_to_ptr.vmem [resolvable:$true] %s466_s0  ;;  %s3092_s15 = int_to_ptr.vmem [resolvable:$true] %s489_s15 }
  0xed   : > { %s2446_s22 = scalar_lea.hbm %s3527_s6, 16 }
  0xee   : > { %p2447_p1 = scmp.ne.s32.totalorder %s3527_s6, %s2446_s22  ;;  %p2453_p0 = scmp.lt.u32.totalorder %s2446_s22, %s3527_s6 }
  0xf0   : > { %p2449_p3 = pnand %p2447_p1, %p2913_p8 }
  0xf2   : > { %p2450_p13 = pneg %p2449_p3 }
  0xf4   : > { %p2455_p2 = pnand %p2453_p0, %p2450_p13 }
  0xf6   : > { %2458 = shalt.err (!%p2455_p2)
}
  0xf7   : > { %s2459_s18 = scalar_lea.vmem %s467_s0, 16  ;;  %s2466_s17 = scalar_lea.vmem %s467_s0, 32 }
  0xf8   : > { %p2460_p5 = scmp.ne.s32.totalorder %s467_s0, %s2459_s18  ;;  %p2467_p10 = scmp.lt.s32.totalorder %s467_s0, %s467_s0 }
  0xf9   : > { %p2468_p4 = scmp.lt.s32.totalorder %s2466_s17, %s2459_s18 }
  0xfa   : > { %p2462_p7 = pnand %p2460_p5, %p2913_p8 }
  0xfb   : > { %p2469_p11 = por %p2468_p4, %p2467_p10 }
  0xfc   : > { %p2463_p9 = pneg %p2462_p7 }
  0xfe   : > { %p2470_p12 = pnand %p2469_p11, %p2463_p9 }
 0x100   : > { %2473 = shalt.err (!%p2470_p12)
}
 0x101   : > { %2064 = dma.hbm_to_vmem [thread:$0]  (!%p2897_p6), %s3527_s6, 16, %s467_s0, [#allocation13]  }
 0x102   : > { %s2474_s14 = scalar_lea.hbm %s3529_s8, 256 }
 0x103   : > { %p2475_p1 = scmp.ne.s32.totalorder %s3529_s8, %s2474_s14  ;;  %p2481_p0 = scmp.lt.u32.totalorder %s2474_s14, %s3529_s8 }
 0x105   : > { %p2477_p3 = pnand %p2475_p1, %p2913_p8 }
 0x107   : > { %p2478_p13 = pneg %p2477_p3 }
 0x109   : > { %p2483_p2 = pnand %p2481_p0, %p2478_p13 }
 0x10b   : > { %2486 = shalt.err (!%p2483_p2)
}
 0x10c   : > { %s2487_s0 = scalar_lea.vmem %s3092_s15, 256  ;;  %p2495_p10 = scmp.lt.s32.totalorder %s3092_s15, %s3092_s15 }
 0x10d   : > { %p2488_p5 = scmp.ne.s32.totalorder %s3092_s15, %s2487_s0  ;;  %p2496_p4 = scmp.lt.s32.totalorder %s2487_s0, %s2487_s0 }
 0x10f   : > { %p2490_p7 = pnand %p2488_p5, %p2913_p8  ;;  %p2497_p11 = por %p2496_p4, %p2495_p10 }
 0x111   : > { %p2491_p9 = pneg %p2490_p7 }
 0x113   : > { %p2498_p12 = pnand %p2497_p11, %p2491_p9 }
 0x115   : > { %2501 = shalt.err (!%p2498_p12)
}
 0x116   : > { %2070 = dma.hbm_to_vmem [thread:$0]  (!%p2897_p6), %s3529_s8, 256, %s3092_s15, [#allocation16], %s2748_s29, %s2748_s29, %s2749_s24  }
 0x117   : > { %s2756_s1 = smov [#allocation20]   ;;  %s2757_s22 = smov [#allocation23]  }
 0x118   : > { %s513_s26 = sshll.u32 %s2756_s1, 4  ;;  %s537_s14 = sshll.u32 %s2757_s22, 4  ;;  %s514_s26 = int_to_ptr.vmem [resolvable:$true] %s513_s26  ;;  %s3138_s14 = int_to_ptr.vmem [resolvable:$true] %s537_s14 }
 0x119   : > { %s2502_s27 = scalar_lea.hbm %s3531_s10, 256 }
 0x11a   : > { %p2503_p1 = scmp.ne.s32.totalorder %s3531_s10, %s2502_s27  ;;  %p2509_p0 = scmp.lt.u32.totalorder %s2502_s27, %s3531_s10 }
 0x11c   : > { %p2505_p3 = pnand %p2503_p1, %p2913_p8 }
 0x11e   : > { %p2506_p13 = pneg %p2505_p3 }
 0x120   : > { %p2511_p2 = pnand %p2509_p0, %p2506_p13 }
 0x122   : > { %2514 = shalt.err (!%p2511_p2)
}
 0x123   : > { %s2515_s25 = scalar_lea.vmem %s514_s26, 256  ;;  %p2523_p10 = scmp.lt.s32.totalorder %s514_s26, %s514_s26 }
 0x124   : > { %p2516_p5 = scmp.ne.s32.totalorder %s514_s26, %s2515_s25  ;;  %p2524_p4 = scmp.lt.s32.totalorder %s2515_s25, %s2515_s25 }
 0x126   : > { %p2518_p7 = pnand %p2516_p5, %p2913_p8  ;;  %p2525_p11 = por %p2524_p4, %p2523_p10 }
 0x128   : > { %p2519_p9 = pneg %p2518_p7 }
 0x12a   : > { %p2526_p12 = pnand %p2525_p11, %p2519_p9 }
 0x12c   : > { %2529 = shalt.err (!%p2526_p12)
}
 0x12d   : > { %2076 = dma.hbm_to_vmem [thread:$0]  (!%p2897_p6), %s3531_s10, 256, %s514_s26, [#allocation19], %s2748_s29, %s2748_s29, %s2749_s24  }
 0x12e   : > { %s2530_s27 = scalar_lea.hbm %s3533_s12, 512 }
 0x12f   : > { %p2531_p1 = scmp.ne.s32.totalorder %s3533_s12, %s2530_s27  ;;  %p2537_p0 = scmp.lt.u32.totalorder %s2530_s27, %s3533_s12 }
 0x131   : > { %p2533_p3 = pnand %p2531_p1, %p2913_p8 }
 0x133   : > { %p2534_p13 = pneg %p2533_p3 }
 0x135   : > { %p2539_p2 = pnand %p2537_p0, %p2534_p13 }
 0x137   : > { %2542 = shalt.err (!%p2539_p2)
}
 0x138   : > { %s2543_s26 = scalar_lea.vmem %s3138_s14, 512  ;;  %p2551_p10 = scmp.lt.s32.totalorder %s3138_s14, %s3138_s14 }
 0x139   : > { %p2544_p5 = scmp.ne.s32.totalorder %s3138_s14, %s2543_s26  ;;  %p2552_p4 = scmp.lt.s32.totalorder %s2543_s26, %s2543_s26 }
 0x13b   : > { %p2546_p7 = pnand %p2544_p5, %p2913_p8  ;;  %p2553_p11 = por %p2552_p4, %p2551_p10 }
 0x13d   : > { %p2547_p9 = pneg %p2546_p7 }
 0x13f   : > { %p2554_p12 = pnand %p2553_p11, %p2547_p9 }
 0x141   : > { %2557 = shalt.err (!%p2554_p12)
}
 0x142   : > { %2082 = dma.hbm_to_vmem [thread:$0]  (!%p2897_p6), %s3533_s12, 512, %s3138_s14, [#allocation22], %s2748_s29, %s2748_s29, %s2749_s24  }
 0x143   : > { %s2758_s22 = smov [#allocation24]   ;;  %s2558_s18 = scalar_lea.hbm %s3534_s13, 16 }
 0x144   : > { %s551_s16 = sshll.u32 %s2758_s22, 4  ;;  %p2559_p1 = scmp.ne.s32.totalorder %s3534_s13, %s2558_s18  ;;  %s552_s16 = int_to_ptr.vmem [resolvable:$true] %s551_s16 }
 0x145   : > { %p2565_p0 = scmp.lt.u32.totalorder %s2558_s18, %s3534_s13 }
 0x146   : > { %p2561_p3 = pnand %p2559_p1, %p2913_p8 }
 0x148   : > { %p2562_p13 = pneg %p2561_p3 }
 0x14a   : > { %p2567_p2 = pnand %p2565_p0, %p2562_p13 }
 0x14c   : > { %2570 = shalt.err (!%p2567_p2)
}
 0x14d   : > { %s2571_s29 = scalar_lea.vmem %s552_s16, 16  ;;  %s2578_s24 = scalar_lea.vmem %s552_s16, 32 }
 0x14e   : > { %p2572_p5 = scmp.ne.s32.totalorder %s552_s16, %s2571_s29  ;;  %p2579_p10 = scmp.lt.s32.totalorder %s552_s16, %s552_s16 }
 0x14f   : > { %p2580_p4 = scmp.lt.s32.totalorder %s2578_s24, %s2571_s29 }
 0x150   : > { %p2574_p7 = pnand %p2572_p5, %p2913_p8 }
 0x151   : > { %p2581_p11 = por %p2580_p4, %p2579_p10 }
 0x152   : > { %p2575_p9 = pneg %p2574_p7 }
 0x154   : > { %p2582_p12 = pnand %p2581_p11, %p2575_p9 }
 0x156   : > { %2585 = shalt.err (!%p2582_p12)
}
 0x157   : > { %s3567_s28 = sld [smem:[#allocation39_spill]]  ;;  %s3568_s1 = sld [smem:[#allocation40_spill]] }
 0x158   : > { %2085 = dma.hbm_to_vmem [thread:$0]  (!%p2897_p6), %s3534_s13, 16, %s552_s16, [#allocation25]  }
 0x159   : > { %s1803_s22 = sadd.s32 4294967294, %s2742_s21   ;;  %s3207_s30 = sadd.s32 1, %s2742_s21  }
 0x15a   : > { %s49_s23 = sadd.s32 1, %s2738_s20  ;;  %s46_s27 = ssub.s32 %s2742_s21, %s3207_s30 }
 0x15b   : > { %p56_p8 = scmp.ne.s32.totalorder %s2738_s20, %s2734_s19  ;;  %p47_p1 = scmp.eq.s32.totalorder %s46_s27, 0 }
 0x15c   : > { %p57_p3 = scmp.eq.s32.totalorder %s2742_s21, 0  ;;  %p365_p9 = scmp.eq.s32.totalorder %s1803_s22, 1 }
 0x15d   : > { %p62_p13 = scmp.ne.s32.totalorder %s2734_s19, %s3567_s28  ;;  %p359_p0 = scmp.eq.s32.totalorder %s3568_s1, 1 }
 0x15e   : > { %s3219_s18 = scalar_select %p47_p1, %s2738_s20, %s49_s23  }
 0x15f   : > { %p58_p2 = por %p57_p3, %p56_p8  ;;  %p3569_p5 = scmp.eq.s32.totalorder %s3568_s1, 0 }
 0x160   : > { %p3227_p6 = por %p359_p0, %p56_p8  ;;  %p2110_p10 = scmp.lt.s32.totalorder %s2742_s21, 2 }
 0x161   : > { %p3223_p7 = por %p3569_p5, %p62_p13  ;;  %s562_s17 = sand.u32 1, %s2738_s20  }
 0x162   : > { %s3571_s16 = scalar_select %p3227_p6, 1, 0 }
 0x163   : > { %p3233_p4 = por %p365_p9, %p62_p13  ;;  %s1819_s26 = sshll.u32 %s562_s17, 3 }
 0x164   : > { %s1820_s29 = sshll.u32 %s2742_s21, 7  ;;  %s3573_s25 = sld [smem:[#allocation42_spill]] }
 0x165   : > { %s3572_s15 = scalar_select %p3233_p4, 1, 0 }
 0x166   : > { %s566_s1 = scalar_lea.vmem [#allocation3], %s1819_s26  ;;  %p3243_p11 = pnand %p2110_p10, %p58_p2 }
 0x167   : > { %s573_s23 = sshll.u32 %s566_s1, 4  ;;  %s563_s27 = scalar_lea.sflag [#allocation4], %s562_s17  ;;  %s3247_s23 = int_to_ptr.vmem [resolvable:$true] %s573_s23 }
 0x168   : > { %p2588_p8 = pneg %p3243_p11 }
 0x16a   : > { %s3241_s28 = scalar_lea.hbm %s3573_s25, %s1820_s29  ;;  %s2591_s24 = scalar_lea.hbm %s3573_s25, 256 }
 0x16b   : > { %s2586_s2 = scalar_lea.hbm %s3241_s28, 128  ;;  %p2592_p13 = scmp.lt.u32.totalorder %s3241_s28, %s3573_s25 }
 0x16c   : > { %p2587_p12 = scmp.ne.s32.totalorder %s3241_s28, %s2586_s2  ;;  %p2593_p0 = scmp.lt.u32.totalorder %s2591_s24, %s2586_s2 }
 0x16d   : > { %p2595_p5 = scmp.lt.u32.totalorder %s2586_s2, %s3241_s28 }
 0x16e   : > { %p2589_p1 = pnand %p2588_p8, %p2587_p12  ;;  %p2594_p2 = por %p2593_p0, %p2592_p13 }
 0x170   : > { %p2590_p3 = pneg %p2589_p1  ;;  %p2596_p9 = por %p2595_p5, %p2594_p2 }
 0x172   : > { %p2597_p10 = pnand %p2596_p9, %p2590_p3 }
 0x174   : > { %2600 = shalt.err (!%p2597_p10)
}
 0x175   : > { %s2601_s17 = scalar_lea.vmem %s3247_s23, 128  ;;  %s2759_s29 = smov [#allocation3]  }
 0x176   : > { %p2602_p12 = scmp.ne.s32.totalorder %s3247_s23, %s2601_s17  ;;  %s2606_s26 = sshll.u32 %s2759_s29, 4  ;;  %s2607_s26 = int_to_ptr.vmem [resolvable:$false] %s2606_s26 }
 0x177   : > { %s2608_s14 = scalar_lea.vmem %s2607_s26, 256  ;;  %p2609_p6 = scmp.lt.s32.totalorder %s3247_s23, %s2607_s26 }
 0x178   : > { %p2604_p1 = pnand %p2602_p12, %p2588_p8  ;;  %p2610_p13 = scmp.lt.s32.totalorder %s2608_s14, %s2601_s17 }
 0x17a   : > { %p2605_p4 = pneg %p2604_p1  ;;  %p2611_p0 = por %p2610_p13, %p2609_p6 }
 0x17c   : > { %p2612_p2 = pnand %p2611_p0, %p2605_p4 }
 0x17e   : > { %2615 = shalt.err (!%p2612_p2)
}
 0x17f   : > { %2089 = dma.hbm_to_vmem [thread:$0]  (!%p3243_p11), %s3241_s28, 128, %s3247_s23, %s563_s27  }
 0x180   : > { %s3575_s2 = sld [smem:[#allocation41_spill]] }
 0x186   : > { %p3576_p3 = scmp.ne.s32.totalorder %s3575_s2, 0 }
 0x187   : > { %s3277_s24 = sand.u32 (!%p3576_p3), 1, %s2734_s19  }
 0x188   : > { %582 = sbr.rel (%p3576_p3) target bundleno = 3618 (0xe22), region = 76  ;;  %s3280_s1 = sshll.u32 (!%p3576_p3), %s3277_s24, 3 }
 0x189   : > { %s585_s17 = scalar_lea.sflag (!%p3576_p3), [#allocation4], %s3277_s24  ;;  %s588_s29 = scalar_lea.vmem (!%p3576_p3), [#allocation3], %s3280_s1 }
 0x18f   : > { %2689 = dma.done.wait (%p3223_p7), %s585_s17, 128  }
 0x190   : > { %2691 = vsyncadd (%p3223_p7), %s585_s17, 4294967168  ;;  %s3577_s28 = sld [smem:[#allocation40_spill]] }
 0x196   : > { %p3578_p6 = scmp.eq.s32.totalorder %s3577_s28, 0 }
 0x198   : > { %2693 = dma.done.wait (%p3578_p6), [#allocation7], 144   ;;  %p3579_p4 = pmov %p3578_p6 }
 0x19a   : > { %2695 = vsyncadd (%p3579_p4), [#allocation7], 4294967152  ;;  %p3580_p11 = pmov %p3579_p4 }
 0x19b   : > { %p3581_p8 = pmov %p3579_p4 }
 0x19c   : > { %2697 = dma.done.wait (%p3580_p11), [#allocation10], 32  }
 0x19d   : > { %2699 = vsyncadd (%p3581_p8), [#allocation10], 4294967264  ;;  %p3582_p5 = pmov %p3579_p4 }
 0x19e   : > { %p3583_p9 = pmov %p3579_p4 }
 0x19f   : > { %2701 = dma.done.wait (%p3582_p5), [#allocation13], 32  }
 0x1a0   : > { %2703 = vsyncadd (%p3583_p9), [#allocation13], 4294967264  ;;  %p3584_p7 = pmov %p3579_p4 }
 0x1a1   : > { %p3585_p10 = pmov %p3579_p4 }
 0x1a2   : > { %2705 = dma.done.wait (%p3584_p7), [#allocation16], 512  }
 0x1a3   : > { %2707 = vsyncadd (%p3585_p10), [#allocation16], 4294966784  ;;  %p3586_p12 = pmov %p3579_p4 }
 0x1a4   : > { %p3587_p1 = pmov %p3579_p4 }
 0x1a5   : > { %2709 = dma.done.wait (%p3586_p12), [#allocation19], 272  }
 0x1a6   : > { %2711 = vsyncadd (%p3587_p1), [#allocation19], 4294967024  ;;  %p3588_p13 = pmov %p3587_p1 }
 0x1a7   : > { %p3589_p0 = pmov %p3587_p1 }
 0x1a8   : > { %2713 = dma.done.wait (%p3588_p13), [#allocation22], 528  }
 0x1a9   : > { %2715 = vsyncadd (%p3589_p0), [#allocation22], 4294966768  ;;  %p3590_p2 = pmov %p3589_p0 }
 0x1aa   : > { %p3591_p3 = pmov %p3589_p0 }
 0x1ab   : > { %2717 = dma.done.wait (%p3590_p2), [#allocation25], 16  }
 0x1ac   : > { %2719 = vsyncadd (%p3591_p3), [#allocation25], 4294967280  ;;  %vm699_vm0 = vcmask 261120   ;;  %v3316_v0 = vld [vmem:[%s588_s29] sm:$0xff]  ;;  %v2760_v8 = vmov 0.0   ;;  %vm2761_vm1 = vmmov 0  }
 0x1ad   : > { %v700_v1 = vsel %vm699_vm0, %v3316_v0, 0.0  ;;  %v2188_v7 = vld [vmem:[#allocation15] sm:$0xff]   ;;  %1904 = vmatprep.subr.bf16.mxu0 %v2760_v8  ;;  %1908 = vmatprep.mubr.msk.bf16.mxu0 %vm2761_vm1, %v2760_v8  ;;  %v2189_v9 = vld [vmem:[#allocation15 + $0x8] sm:$0xff]   ;;  %v3330_v14 = vld [vmem:[#allocation8] ss:$0 sm:$0xff]  ;;  %s2762_s0 = smov 120  }
 0x1ae   : > { %701 = vadd.xlane.f32.xlu0 %v700_v1  ;;  %1905 = vmatpush3.bf16.msra.mxu0 %v2188_v7  ;;  %v3332_v16 = vld [vmem:[#allocation9] ss:$0 sm:$0xff]  ;;  %v788_v20 = vld [vmem:[#allocation6] sm:$0xff]  ;;  %s2763_s23 = smov 96   ;;  %s2764_s22 = smov 88   ;;  %vm794_vm2 = vcmask 64512  }
 0x1af   : > { %1912 = vmatprep.subr.bf16.mxu1 %v2760_v8  ;;  %1906 = vmatprep.subr.bf16.mxu0 %v2760_v8  ;;  %s2765_s27 = smov 80   ;;  %s2766_s26 = smov 112   ;;  %vm859_vm3 = vcmask 1043456   ;;  %vm1019_vm4 = vcmask 130112   ;;  %vm1136_vm5 = vcmask 195712   ;;  %vm1253_vm6 = vcmask 261312  }
 0x1b0   : > { %1914 = vmatprep.mubr.msk.bf16.mxu1 %vm2761_vm1, %v2760_v8  ;;  %s2767_s14 = smov 72   ;;  %s2768_s2 = smov 104   ;;  %vm1481_vm7 = vcmask 523264  }
 0x1b1   : > { %s2769_s17 = smov 64   ;;  %s2770_s29 = smov 56  }
 0x1b2   : > { %1907 = vmatpush3.bf16.msra.mxu0 %v2189_v9  ;;  %p3593_p4 = scmp.ne.s32.totalorder %s3571_s16, 0  ;;  %s2776_s3 = smov [#allocation27]  }
 0x1b3   : > { %1918 = vmatprep.subr.bf16.mxu0 %v2760_v8  ;;  %s2620_s4 = sshll.u32 %s2776_s3, 4  ;;  %s2621_s4 = int_to_ptr.vmem [resolvable:$false] %s2620_s4 }
 0x1b4   : > { %s2622_s5 = scalar_lea.vmem %s2621_s4, 256 }
 0x23b   : > { %v702_v2 = vpop.xlane.xlu0 %701 }
 0x23c   : > { %v704_v3 = vmul.f32 0.03125, %v702_v2 }
 0x23e   : > { %v705_v4 = vsub.f32 %v3316_v0, %v704_v3 }
 0x240   : > { %v706_v5 = vmul.f32 %v705_v4, %v705_v4 }
 0x242   : > { %v707_v6 = vsel %vm699_vm0, %v706_v5, 0.0 }
 0x243   : > { %708 = vadd.xlane.f32.xlu0 %v707_v6 }
 0x2d0   : > { %v709_v10 = vpop.xlane.xlu0 %708 }
 0x2d1   : > { %v710_v11 = vmul.f32 0.03125, %v709_v10 }
 0x2d3   : > { %v711_v12 = vadd.f32 1e-05, %v710_v11 }
 0x2d5   : > { %2198 = vrsqrt.f32 %v711_v12 }
 0x2df   : > { %v2199_v13 = vpop.eup %2198 }
 0x2e0   : > { %v713_v15 = vmul.f32 %v2199_v13, %v705_v4 }
 0x2e2   : > { %v720_v17 = vmul.f32 %v3330_v14, %v713_v15 }
 0x2e4   : > { %v727_v18 = vadd.f32 %v3332_v16, %v720_v17 }
 0x2e6   : > { %v728_v19 = vpack.c.bf16 %v727_v18, %v727_v18 }
 0x2e8   : > { %1909 = vmatmul.mubr.msk.bf16.vlgmr.msra.gmra.mrb[0].mxu0 %vm699_vm0, %v728_v19 }
 0x2e9   : > { %1920 = vmatprep.mubr.msk.bf16.mxu0 %vm2761_vm1, %v2760_v8 }
 0x3bb   : > { %v782_v21 = vpop.f32.mrb[0].mxu0 }
 0x3bc   : > { %v789_v22 = vadd.f32 %v788_v20, %v782_v21  ;;  %v1910_v23 = vpop.f32.mrb[1].mxu0 }
 0x3bd   : > { %v785_v24 = vpop.f32.mrb[2].mxu0 }
 0x3be   : > { %v3339_v25 = vpack.c.bf16 %v789_v22, %v789_v22  ;;  %v1911_v26 = vpop.f32.mrb[3].mxu0 }
 0x3c0   : > { %904 = vrot.lane.b32.xlu0 %v3339_v25, %s2762_s0  ;;  %792 = vrot.lane.b32.xlu1 %v3339_v25, %s2763_s23  ;;  %s2771_s0 = smov 48   ;;  %s2772_s23 = smov 40  }
 0x3c4   : > { %906 = vrot.lane.b32.xlu1 %v3339_v25, %s2764_s22  ;;  %s691_s22 = scalar_lea.vmem [#allocation27], %s3280_s1 }
 0x3c8   : > { %1023 = vrot.lane.b32.xlu1 %v3339_v25, %s2765_s27  ;;  %s2773_s27 = smov 8  }
 0x3cc   : > { %1021 = vrot.lane.b32.xlu1 %v3339_v25, %s2766_s26  ;;  %s2774_s26 = smov 16  }
 0x3d0   : > { %1140 = vrot.lane.b32.xlu1 %v3339_v25, %s2767_s14  ;;  %s2775_s14 = smov 24  }
 0x3d4   : > { %1138 = vrot.lane.b32.xlu1 %v3339_v25, %s2768_s2  ;;  %s3547_s2 = sshll.u32 %s3577_s28, 7 }
 0x432   : > { %v793_v27 = vpop.permute.xlu1 %792  ;;  %v905_v32 = vpop.permute.xlu0 %904 }
 0x433   : > { %v799_v28 = vsel %vm794_vm2, %v793_v27, 0 }
 0x434   : > { %1913 = vmatpush3.bf16.xpose.msra.mxu1 %v799_v28 }
 0x435   : > { %1924 = vmatprep.subr.bf16.mxu1 %v2760_v8 }
 0x436   : > { %v907_v29 = vpop.permute.xlu1 %906 }
 0x437   : > { %v912_v30 = vsel %vm794_vm2, %v907_v29, 0 }
 0x43a   : > { %v1024_v31 = vpop.permute.xlu1 %1023 }
 0x43b   : > { %1915 = vmatmul.mubr.msk.bf16.vlgmr.msra.gmra.mrb[0].mxu1 %vm794_vm2, %v3339_v25  ;;  %v1029_v34 = vsel %vm794_vm2, %v1024_v31, 0 }
 0x43c   : > { %1925 = vmatpush3.bf16.xpose.msra.mxu1 %v912_v30  ;;  %1926 = vmatprep.mubr.msk.bf16.mxu1 %vm2761_vm1, %v2760_v8 }
 0x43d   : > { %1936 = vmatprep.subr.bf16.mxu1 %v2760_v8 }
 0x43e   : > { %v1022_v33 = vpop.permute.xlu1 %1021 }
 0x442   : > { %v1141_v35 = vpop.permute.xlu1 %1140 }
 0x443   : > { %1927 = vmatmul.mubr.msk.bf16.vlgmr.msra.gmra.mrb[4].mxu1 %vm794_vm2, %v905_v32  ;;  %v1146_v36 = vsel %vm794_vm2, %v1141_v35, 0 }
 0x444   : > { %1937 = vmatpush3.bf16.xpose.msra.mxu1 %v1029_v34  ;;  %1938 = vmatprep.mubr.msk.bf16.mxu1 %vm2761_vm1, %v2760_v8 }
 0x445   : > { %1948 = vmatprep.subr.bf16.mxu1 %v2760_v8 }
 0x446   : > { %v1139_v37 = vpop.permute.xlu1 %1138 }
 0x44b   : > { %1939 = vmatmul.mubr.msk.bf16.vlgmr.msra.gmra.mrb[8].mxu1 %vm794_vm2, %v1022_v33 }
 0x44c   : > { %1949 = vmatpush3.bf16.xpose.msra.mxu1 %v1146_v36  ;;  %1950 = vmatprep.mubr.msk.bf16.mxu1 %vm2761_vm1, %v2760_v8 }
 0x44d   : > { %1960 = vmatprep.subr.bf16.mxu1 %v2760_v8 }
 0x453   : > { %1951 = vmatmul.mubr.msk.bf16.vlgmr.msra.gmra.mrb[12].mxu1 %vm794_vm2, %v1139_v37 }
 0x454   : > { %1964 = vmatprep.mubr.msk.bf16.mxu1 %vm2761_vm1, %v2760_v8 }
 0x50e   : > { %v835_v38 = vpop.f32.mrb[0].mxu1 }
 0x50f   : > { %v1916_v39 = vpop.f32.mrb[1].mxu1  ;;  %v841_v40 = vsel %vm794_vm2, %v835_v38, -inf }
 0x510   : > { %842 = vmax.xlane.f32.xlu1 %v841_v40  ;;  %v838_v41 = vpop.f32.mrb[2].mxu1 }
 0x511   : > { %v1917_v42 = vpop.f32.mrb[3].mxu1 }
 0x516   : > { %v948_v43 = vpop.f32.mrb[4].mxu1 }
 0x517   : > { %v1928_v44 = vpop.f32.mrb[5].mxu1  ;;  %v954_v45 = vsel %vm794_vm2, %v948_v43, -inf }
 0x518   : > { %955 = vmax.xlane.f32.xlu0 %v954_v45  ;;  %v951_v46 = vpop.f32.mrb[6].mxu1 }
 0x519   : > { %v1929_v47 = vpop.f32.mrb[7].mxu1 }
 0x51e   : > { %v1065_v48 = vpop.f32.mrb[8].mxu1 }
 0x51f   : > { %v1940_v49 = vpop.f32.mrb[9].mxu1  ;;  %v1071_v50 = vsel %vm794_vm2, %v1065_v48, -inf }
 0x520   : > { %1072 = vmax.xlane.f32.xlu1 %v1071_v50  ;;  %v1068_v51 = vpop.f32.mrb[10].mxu1 }
 0x521   : > { %v1941_v52 = vpop.f32.mrb[11].mxu1 }
 0x526   : > { %v1182_v53 = vpop.f32.mrb[12].mxu1 }
 0x527   : > { %v1952_v54 = vpop.f32.mrb[13].mxu1  ;;  %v1188_v55 = vsel %vm794_vm2, %v1182_v53, -inf }
 0x528   : > { %1189 = vmax.xlane.f32.xlu0 %v1188_v55  ;;  %v1185_v56 = vpop.f32.mrb[14].mxu1  ;;  %v2190_v54 = vld [vmem:[#allocation17] sm:$0xff]   ;;  %v2191_v55 = vld [vmem:[#allocation17 + $0x8] sm:$0xff]  }
 0x529   : > { %v1953_v57 = vpop.f32.mrb[15].mxu1  ;;  %1961 = vmatpush3.bf16.msra.mxu1 %v2190_v54 }
 0x52a   : > { %1962 = vmatprep.subr.bf16.mxu1 %v2760_v8 }
 0x52d   : > { %1963 = vmatpush3.bf16.msra.mxu1 %v2191_v55 }
 0x52e   : > { %1976 = vmatprep.subr.bf16.mxu1 %v2760_v8 }
 0x59d   : > { %v843_v58 = vpop.xlane.xlu1 %842 }
 0x59e   : > { %v844_v59 = vsub.f32 %v835_v38, %v843_v58 }
 0x5a0   : > { %v845_v60 = vmul.f32 1.442695, %v844_v59 }
 0x5a2   : > { %2200 = vpow2.f32 %v845_v60 }
 0x5a5   : > { %v956_v61 = vpop.xlane.xlu0 %955 }
 0x5a6   : > { %v957_v62 = vsub.f32 %v948_v43, %v956_v61 }
 0x5a8   : > { %v958_v63 = vmul.f32 1.442695, %v957_v62 }
 0x5aa   : > { %2202 = vpow2.f32 %v958_v63 }
 0x5ac   : > { %v2201_v1 = vpop.eup %2200 }
 0x5ad   : > { %v847_v2 = vsel %vm794_vm2, %v2201_v1, 0.0  ;;  %v1073_v11 = vpop.xlane.xlu1 %1072 }
 0x5ae   : > { %848 = vadd.xlane.f32.xlu1 %v847_v2  ;;  %v1074_v12 = vsub.f32 %v1065_v48, %v1073_v11 }
 0x5b0   : > { %v1075_v13 = vmul.f32 1.442695, %v1074_v12 }
 0x5b4   : > { %v2203_v3 = vpop.eup %2202 }
 0x5b5   : > { %v1190_v4 = vpop.xlane.xlu0 %1189  ;;  %v960_v5 = vsel %vm794_vm2, %v2203_v3, 0.0 }
 0x5b6   : > { %v1191_v6 = vsub.f32 %v1182_v53, %v1190_v4  ;;  %961 = vadd.xlane.f32.xlu0 %v960_v5 }
 0x5b8   : > { %v1192_v7 = vmul.f32 1.442695, %v1191_v6  ;;  %v1851_v6 = vld [vmem:[#allocation18] ss:$0 sm:$0xff] }
 0x5ba   : > { %2204 = vpow2.f32 %v1192_v7 }
 0x5bb   : > { %2206 = vpow2.f32 %v1075_v13 }
 0x5bf   : > { %854 = vrot.lane.b32.xlu1 %v3339_v25, %s2769_s17 }
 0x5c4   : > { %v2205_v9 = vpop.eup %2204 }
 0x5c5   : > { %v1194_v10 = vsel %vm794_vm2, %v2205_v9, 0.0  ;;  %v2207_v15 = vpop.eup %2206 }
 0x5c6   : > { %1195 = vadd.xlane.f32.xlu0 %v1194_v10  ;;  %v1077_v17 = vsel %vm794_vm2, %v2207_v15, 0.0 }
 0x5dc   : > { %967 = vrot.lane.b32.xlu0 %v3339_v25, %s2770_s29 }
 0x5e3   : > { %1078 = vadd.xlane.f32.xlu1 %v1077_v17 }
 0x5f4   : > { %1084 = vrot.lane.b32.xlu1 %v3339_v25, %s2771_s0  ;;  %s3592_s0 = sld [smem:[#allocation49_spill]] }
 0x5f8   : > { %1201 = vrot.lane.b32.xlu1 %v3339_v25, %s2772_s23 }
 0x5fa   : > { %s3444_s23 = scalar_lea.hbm %s3592_s0, %s3547_s2 }
 0x63b   : > { %v849_v18 = vpop.xlane.xlu1 %848 }
 0x63c   : > { %2208 = vrcp.f32 %v849_v18 }
 0x63f   : > { %v855_v19 = vpop.permute.xlu1 %854 }
 0x640   : > { %v861_v20 = vsel %vm859_vm3, %v855_v19, 0 }
 0x641   : > { %1919 = vmatpush3.bf16.msra.mxu0 %v861_v20 }
 0x642   : > { %1930 = vmatprep.subr.bf16.mxu0 %v2760_v8 }
 0x643   : > { %v962_v22 = vpop.xlane.xlu0 %961 }
 0x644   : > { %2210 = vrcp.f32 %v962_v22 }
 0x646   : > { %v2209_v21 = vpop.eup %2208 }
 0x647   : > { %v851_v23 = vmul.f32 %v2209_v21, %v2201_v1 }
 0x649   : > { %v853_v24 = vpack.c.bf16 %v851_v23, %v851_v23 }
 0x64b   : > { %1921 = vmatmul.mubr.msk.bf16.vlgmr.msra.gmra.mrb[4].mxu0 %vm794_vm2, %v853_v24 }
 0x64c   : > { %1932 = vmatprep.mubr.msk.bf16.mxu0 %vm2761_vm1, %v2760_v8 }
 0x64e   : > { %v2211_v25 = vpop.eup %2210 }
 0x64f   : > { %v964_v27 = vmul.f32 %v2211_v25, %v2203_v3  ;;  %v3413_v25 = vld [vmem:[#allocation11] ss:$0 sm:$0xff] }
 0x651   : > { %v966_v30 = vpack.c.bf16 %v964_v27, %v964_v27  ;;  %v965_v36 = vadd.f32 %v964_v27, %v851_v23  ;;  %v3415_v27 = vld [vmem:[#allocation12] ss:$0 sm:$0xff] }
 0x653   : > { %v1196_v26 = vpop.xlane.xlu0 %1195 }
 0x654   : > { %2212 = vrcp.f32 %v1196_v26 }
 0x657   : > { %v968_v28 = vpop.permute.xlu0 %967 }
 0x658   : > { %v973_v29 = vsel %vm859_vm3, %v968_v28, 0 }
 0x659   : > { %1931 = vmatpush3.bf16.msra.mxu0 %v973_v29  ;;  %v3418_v29 = vld [vmem:[#allocation14] ss:$0 sm:$0xff] }
 0x65a   : > { %1942 = vmatprep.subr.bf16.mxu0 %v2760_v8 }
 0x65c   : > { %1933 = vmatmul.mubr.msk.bf16.vlgmr.msra.gmra.mrb[8].mxu0 %vm794_vm2, %v966_v30 }
 0x65d   : > { %1944 = vmatprep.mubr.msk.bf16.mxu0 %vm2761_vm1, %v2760_v8 }
 0x65e   : > { %v2213_v34 = vpop.eup %2212 }
 0x65f   : > { %v1198_v39 = vmul.f32 %v2213_v34, %v2205_v9 }
 0x661   : > { %v1200_v45 = vpack.c.bf16 %v1198_v39, %v1198_v39 }
 0x670   : > { %v1079_v31 = vpop.xlane.xlu1 %1078 }
 0x671   : > { %2214 = vrcp.f32 %v1079_v31 }
 0x674   : > { %v1085_v32 = vpop.permute.xlu1 %1084 }
 0x675   : > { %v1090_v33 = vsel %vm859_vm3, %v1085_v32, 0 }
 0x676   : > { %1943 = vmatpush3.bf16.msra.mxu0 %v1090_v33 }
 0x677   : > { %1954 = vmatprep.subr.bf16.mxu0 %v2760_v8 }
 0x678   : > { %v1202_v38 = vpop.permute.xlu1 %1201 }
 0x679   : > { %v1207_v42 = vsel %vm859_vm3, %v1202_v38, 0 }
 0x67b   : > { %v2215_v35 = vpop.eup %2214 }
 0x67c   : > { %v1081_v37 = vmul.f32 %v2215_v35, %v2207_v15 }
 0x67e   : > { %v1082_v40 = vadd.f32 %v1081_v37, %v965_v36  ;;  %v1083_v41 = vpack.c.bf16 %v1081_v37, %v1081_v37 }
 0x680   : > { %1945 = vmatmul.mubr.msk.bf16.vlgmr.msra.gmra.mrb[12].mxu0 %vm794_vm2, %v1083_v41  ;;  %v1199_v43 = vadd.f32 %v1198_v39, %v1082_v40  ;;  %v2192_v39 = vld [vmem:[#allocation20] sm:$0xff]   ;;  %v2193_v40 = vld [vmem:[#allocation20 + $0x8] sm:$0xff]  }
 0x681   : > { %1955 = vmatpush3.bf16.msra.mxu0 %v1207_v42  ;;  %1956 = vmatprep.mubr.msk.bf16.mxu0 %vm2761_vm1, %v2760_v8  ;;  %v2195_v41 = vld [vmem:[#allocation23 + $0x8] sm:$0xff]  }
 0x682   : > { %1968 = vmatprep.subr.bf16.mxu0 %v2760_v8  ;;  %v1543_v44 = vmul.f32 0.25, %v1199_v43 }
 0x684   : > { %1544 = vst.msk [vmem:[%s691_s22] sm:$0xff] %vm794_vm2, %v1543_v44 }
 0x688   : > { %1957 = vmatmul.mubr.msk.bf16.vlgmr.msra.gmra.mrb[16].mxu0 %vm794_vm2, %v1200_v45 }
 0x689   : > { %1972 = vmatprep.mubr.msk.bf16.mxu0 %vm2761_vm1, %v2760_v8  ;;  %1969 = vmatpush3.bf16.msra.mxu0 %v2192_v39 }
 0x68a   : > { %1970 = vmatprep.subr.bf16.mxu0 %v2760_v8 }
 0x68d   : > { %1971 = vmatpush3.bf16.msra.mxu0 %v2193_v40 }
 0x71e   : > { %v897_v46 = vpop.f32.mrb[4].mxu0 }
 0x71f   : > { %903 = vst.msk [vmem:[#allocation2] sm:$0xff] %vm794_vm2, %v897_v46  ;;  %v1922_v47 = vpop.f32.mrb[5].mxu0 }
 0x720   : > { %v900_v48 = vpop.f32.mrb[6].mxu0 }
 0x721   : > { %v1923_v49 = vpop.f32.mrb[7].mxu0 }
 0x72f   : > { %v1009_v50 = vpop.f32.mrb[8].mxu0 }
 0x730   : > { %1016 = vrot.lane.b32.xlu0 %v1009_v50, %s2773_s27  ;;  %v1934_v51 = vpop.f32.mrb[9].mxu0  ;;  %v2196_v50 = vld [vmem:[#allocation23 + $0x10] sm:$0xff]   ;;  %s1577_s27 = sshll.u32 %s691_s22, 4  ;;  %s1578_s27 = int_to_ptr.vmem [resolvable:$true] %s1577_s27 }
 0x731   : > { %v1012_v52 = vpop.f32.mrb[10].mxu0  ;;  %v2197_v51 = vld [vmem:[#allocation23 + $0x18] sm:$0xff]   ;;  %p2623_p5 = scmp.lt.s32.totalorder %s1578_s27, %s2621_s4 }
 0x732   : > { %v1935_v53 = vpop.f32.mrb[11].mxu0  ;;  %v1858_v52 = vld [vmem:[#allocation21] ss:$0 sm:$0xff] }
 0x753   : > { %v1126_v56 = vpop.f32.mrb[12].mxu0 }
 0x754   : > { %1133 = vrot.lane.b32.xlu1 %v1126_v56, %s2774_s26  ;;  %v1946_v57 = vpop.f32.mrb[13].mxu0  ;;  %s1551_s26 = scalar_lea.sflag [#allocation28], %s3277_s24 }
 0x755   : > { %v1129_v58 = vpop.f32.mrb[14].mxu0 }
 0x756   : > { %v1947_v59 = vpop.f32.mrb[15].mxu0 }
 0x75b   : > { %v1243_v60 = vpop.f32.mrb[16].mxu0 }
 0x75c   : > { %1250 = vrot.lane.b32.xlu0 %v1243_v60, %s2775_s14  ;;  %v1958_v61 = vpop.f32.mrb[17].mxu0  ;;  %s2616_s14 = scalar_lea.vmem %s1578_s27, 128 }
 0x75d   : > { %v1246_v62 = vpop.f32.mrb[18].mxu0  ;;  %p2617_p6 = scmp.ne.s32.totalorder %s1578_s27, %s2616_s14  ;;  %p2624_p9 = scmp.lt.s32.totalorder %s2622_s5, %s2616_s14 }
 0x75e   : > { %v1959_v63 = vpop.f32.mrb[19].mxu0 }
 0x75f   : > { %p2618_p11 = pnand %p2617_p6, %p3593_p4  ;;  %p2625_p7 = por %p2624_p9, %p2623_p5 }
 0x761   : > { %p2619_p8 = pneg %p2618_p11 }
 0x763   : > { %p2626_p10 = pnand %p2625_p7, %p2619_p8 }
 0x7a2   : > { %v1017_v1 = vpop.permute.xlu0 %1016 }
 0x7a3   : > { %1020 = vst.msk [vmem:[#allocation2] sm:$0xff] %vm1019_vm4, %v1017_v1 }
 0x7c6   : > { %v1134_v2 = vpop.permute.xlu1 %1133 }
 0x7c7   : > { %1137 = vst.msk [vmem:[#allocation2] sm:$0xff] %vm1136_vm5, %v1134_v2 }
 0x7ce   : > { %v1251_v3 = vpop.permute.xlu0 %1250 }
 0x7cf   : > { %1254 = vst.msk [vmem:[#allocation2] sm:$0xff] %vm1253_vm6, %v1251_v3 }
 0x7d6   : > { %v1255_v4 = vld [vmem:[#allocation2] sm:$0xff] }
 0x7d7   : > { %v1256_v5 = vpack.c.bf16 %v1255_v4, %v1255_v4 }
 0x7d9   : > { %1965 = vmatmul.mubr.msk.bf16.vlgmr.msra.gmra.mrb[16].mxu1 %vm699_vm0, %v1256_v5 }
 0x7da   : > { %1984 = vmatprep.mubr.msk.bf16.mxu1 %vm2761_vm1, %v2760_v8 }
 0x8ac   : > { %v1317_v7 = vpop.f32.mrb[16].mxu1 }
 0x8ad   : > { %v1318_v9 = vadd.f32 %v1851_v6, %v1317_v7  ;;  %v1966_v10 = vpop.f32.mrb[17].mxu1 }
 0x8ae   : > { %v1320_v11 = vpop.f32.mrb[18].mxu1 }
 0x8af   : > { %v1967_v12 = vpop.f32.mrb[19].mxu1  ;;  %v1323_v13 = vsel %vm699_vm0, %v1318_v9, 0.0 }
 0x8b0   : > { %1324 = vadd.xlane.f32.xlu1 %v1323_v13 }
 0x93d   : > { %v1325_v15 = vpop.xlane.xlu1 %1324 }
 0x93e   : > { %v1326_v17 = vmul.f32 0.03125, %v1325_v15 }
 0x940   : > { %v1327_v18 = vsub.f32 %v1318_v9, %v1326_v17 }
 0x942   : > { %v1328_v19 = vmul.f32 %v1327_v18, %v1327_v18 }
 0x944   : > { %v1329_v20 = vsel %vm699_vm0, %v1328_v19, 0.0 }
 0x945   : > { %1330 = vadd.xlane.f32.xlu0 %v1329_v20 }
 0x9d2   : > { %v1331_v21 = vpop.xlane.xlu0 %1330 }
 0x9d3   : > { %v1332_v22 = vmul.f32 0.03125, %v1331_v21 }
 0x9d5   : > { %v1333_v23 = vadd.f32 1e-05, %v1332_v22 }
 0x9d7   : > { %2216 = vrsqrt.f32 %v1333_v23 }
 0x9e1   : > { %v2217_v24 = vpop.eup %2216 }
 0x9e2   : > { %v1335_v26 = vmul.f32 %v2217_v24, %v1327_v18 }
 0x9e4   : > { %v1342_v28 = vmul.f32 %v3413_v25, %v1335_v26 }
 0x9e6   : > { %v1349_v30 = vadd.f32 %v3415_v27, %v1342_v28 }
 0x9e8   : > { %v1356_v31 = vmul.f32 %v3418_v29, %v1349_v30 }
 0x9ea   : > { %v3423_v32 = vadd.f32 %v1356_v31, %v3316_v0  ;;  %v2194_v0 = vld [vmem:[#allocation23] sm:$0xff]  }
 0x9eb   : > { %1977 = vmatpush3.bf16.msra.mxu1 %v2194_v0 }
 0x9ec   : > { %v1358_v33 = vsel %vm699_vm0, %v3423_v32, 0.0  ;;  %1978 = vmatprep.subr.bf16.mxu1 %v2760_v8 }
 0x9ed   : > { %1359 = vadd.xlane.f32.xlu0 %v1358_v33 }
 0x9ef   : > { %1979 = vmatpush3.bf16.msra.mxu1 %v2195_v41 }
 0x9f0   : > { %1980 = vmatprep.subr.bf16.mxu1 %v2760_v8 }
 0x9f3   : > { %1981 = vmatpush3.bf16.msra.mxu1 %v2196_v50 }
 0x9f4   : > { %1982 = vmatprep.subr.bf16.mxu1 %v2760_v8 }
 0x9f7   : > { %1983 = vmatpush3.bf16.msra.mxu1 %v2197_v51 }
 0xa7a   : > { %v1360_v34 = vpop.xlane.xlu0 %1359 }
 0xa7b   : > { %v1361_v35 = vmul.f32 0.03125, %v1360_v34 }
 0xa7d   : > { %v1362_v36 = vsub.f32 %v3423_v32, %v1361_v35 }
 0xa7f   : > { %v1363_v37 = vmul.f32 %v1362_v36, %v1362_v36 }
 0xa81   : > { %v1364_v38 = vsel %vm699_vm0, %v1363_v37, 0.0 }
 0xa82   : > { %1365 = vadd.xlane.f32.xlu1 %v1364_v38 }
 0xb0f   : > { %v1366_v42 = vpop.xlane.xlu1 %1365 }
 0xb10   : > { %v1367_v43 = vmul.f32 0.03125, %v1366_v42 }
 0xb12   : > { %v1368_v44 = vadd.f32 1e-05, %v1367_v43 }
 0xb14   : > { %2218 = vrsqrt.f32 %v1368_v44 }
 0xb1e   : > { %v2219_v45 = vpop.eup %2218 }
 0xb1f   : > { %v1370_v46 = vmul.f32 %v2219_v45, %v1362_v36 }
 0xb21   : > { %v1371_v47 = vmul.f32 %v3330_v14, %v1370_v46 }
 0xb23   : > { %v1372_v48 = vadd.f32 %v3332_v16, %v1371_v47  ;;  %v1862_v16 = vld [vmem:[#allocation24] ss:$0 sm:$0xff] }
 0xb25   : > { %v1373_v49 = vpack.c.bf16 %v1372_v48, %v1372_v48 }
 0xb27   : > { %1973 = vmatmul.mubr.msk.bf16.vlgmr.msra.gmra.mrb[20].mxu0 %vm699_vm0, %v1373_v49 }
 0xbfa   : > { %v1434_v53 = vpop.f32.mrb[20].mxu0 }
 0xbfb   : > { %v1435_v54 = vadd.f32 %v1858_v52, %v1434_v53  ;;  %v1974_v55 = vpop.f32.mrb[21].mxu0 }
 0xbfc   : > { %v1437_v56 = vpop.f32.mrb[22].mxu0 }
 0xbfd   : > { %v1440_v57 = vmax.f32 %v1435_v54, 0.0  ;;  %v1975_v58 = vpop.f32.mrb[23].mxu0 }
 0xbff   : > { %v1441_v14 = vpack.c.bf16 %v1440_v57, %v1440_v57 }
 0xc01   : > { %1985 = vmatmul.mubr.msk.bf16.vlgmr.msra.gmra.mrb[20].mxu1 %vm1481_vm7, %v1441_v14 }
 0xcd4   : > { %v1519_v59 = vpop.f32.mrb[20].mxu1 }
 0xcd5   : > { %v1520_v60 = vadd.f32 %v1862_v16, %v1519_v59  ;;  %v1986_v8 = vpop.f32.mrb[21].mxu1 }
 0xcd6   : > { %v1522_v61 = vpop.f32.mrb[22].mxu1 }
 0xcd7   : > { %v1987_v62 = vpop.f32.mrb[23].mxu1  ;;  %v1525_v63 = vsel %vm699_vm0, %v1520_v60, 0.0 }
 0xcd8   : > { %1526 = vadd.xlane.f32.xlu0 %v1525_v63 }
 0xd65   : > { %v1527_v1 = vpop.xlane.xlu0 %1526 }
 0xd66   : > { %v1528_v2 = vmul.f32 0.03125, %v1527_v1 }
 0xd68   : > { %v1529_v3 = vsub.f32 %v1520_v60, %v1528_v2 }
 0xd6a   : > { %v1530_v4 = vmul.f32 %v1529_v3, %v1529_v3 }
 0xd6c   : > { %v1531_v5 = vsel %vm699_vm0, %v1530_v4, 0.0 }
 0xd6d   : > { %1532 = vadd.xlane.f32.xlu1 %v1531_v5 }
 0xd6e   : > { %2629 = shalt.err (!%p2626_p10)
}
 0xd6f   : > { %s2630_s22 = scalar_lea.hbm %s3444_s23, 128  ;;  %s2634_s3 = scalar_lea.hbm %s3592_s0, 256 }
 0xd70   : > { %p2631_p12 = scmp.ne.s32.totalorder %s3444_s23, %s2630_s22  ;;  %p2635_p0 = scmp.lt.u32.totalorder %s3444_s23, %s3592_s0 }
 0xd71   : > { %p2636_p2 = scmp.lt.u32.totalorder %s2634_s3, %s2630_s22  ;;  %p2638_p6 = scmp.lt.u32.totalorder %s2630_s22, %s3444_s23 }
 0xd72   : > { %p2632_p1 = pnand %p2631_p12, %p3593_p4 }
 0xd73   : > { %p2637_p3 = por %p2636_p2, %p2635_p0 }
 0xd74   : > { %p2633_p13 = pneg %p2632_p1 }
 0xd75   : > { %p2639_p11 = por %p2638_p6, %p2637_p3 }
 0xd77   : > { %p2640_p8 = pnand %p2639_p11, %p2633_p13 }
 0xd79   : > { %2643 = shalt.err (!%p2640_p8)
}
 0xd7a   : > { %2043 = dma.vmem_to_hbm [thread:$0]  (%p3593_p4), %s1578_s27, 128, %s3444_s23, %s1551_s26  }
 0xd7b   : > { %s684_s5 = scalar_lea.vmem [#allocation26], %s3280_s1  ;;  %s3594_s14 = sshll.u32 %s3577_s28, 7 }
 0xd7c   : > { %s1564_s2 = sshll.u32 %s684_s5, 4  ;;  %s3595_s26 = sld [smem:[#allocation48_spill]]  ;;  %s3478_s2 = int_to_ptr.vmem [resolvable:$true] %s1564_s2 }
 0xd7d   : > { %s1546_s17 = scalar_lea.sflag [#allocation5], %s3277_s24  ;;  %s2644_s1 = scalar_lea.vmem %s3478_s2, 128 }
 0xd7e   : > { %p2645_p5 = scmp.ne.s32.totalorder %s3478_s2, %s2644_s1  ;;  %s2777_s29 = smov [#allocation26]  }
 0xd7f   : > { %s2648_s28 = sshll.u32 %s2777_s29, 4  ;;  %s2649_s28 = int_to_ptr.vmem [resolvable:$false] %s2648_s28 }
 0xd80   : > { %p2646_p9 = pnand %p2645_p5, %p3593_p4  ;;  %s2650_s3 = scalar_lea.vmem %s2649_s28, 256 }
 0xd81   : > { %p2651_p10 = scmp.lt.s32.totalorder %s3478_s2, %s2649_s28  ;;  %p2652_p12 = scmp.lt.s32.totalorder %s2650_s3, %s2644_s1 }
 0xd82   : > { %s3476_s22 = scalar_lea.hbm %s3595_s26, %s3594_s14  ;;  %p2647_p7 = pneg %p2646_p9 }
 0xd83   : > { %p2653_p1 = por %p2652_p12, %p2651_p10 }
 0xd85   : > { %p2654_p13 = pnand %p2653_p1, %p2647_p7 }
 0xdfa   : > { %v1533_v6 = vpop.xlane.xlu1 %1532 }
 0xdfb   : > { %v1534_v7 = vmul.f32 0.03125, %v1533_v6 }
 0xdfd   : > { %v1535_v9 = vadd.f32 1e-05, %v1534_v7 }
 0xdff   : > { %2220 = vrsqrt.f32 %v1535_v9 }
 0xe09   : > { %v2221_v10 = vpop.eup %2220 }
 0xe0a   : > { %v1537_v11 = vmul.f32 %v2221_v10, %v1529_v3 }
 0xe0c   : > { %v1538_v12 = vmul.f32 %v3413_v25, %v1537_v11 }
 0xe0e   : > { %v1539_v13 = vadd.f32 %v3415_v27, %v1538_v12 }
 0xe10   : > { %v1540_v15 = vmul.f32 %v3418_v29, %v1539_v13 }
 0xe12   : > { %v1541_v17 = vadd.f32 %v1540_v15, %v3423_v32 }
 0xe14   : > { %1542 = vst.msk [vmem:[%s684_s5] sm:$0xff] %vm699_vm0, %v1541_v17 }
 0xe15   : > { %2657 = shalt.err (!%p2654_p13)
}
 0xe16   : > { %s2658_s24 = scalar_lea.hbm %s3476_s22, 128  ;;  %s2662_s14 = scalar_lea.hbm %s3595_s26, 256 }
 0xe17   : > { %p2659_p0 = scmp.ne.s32.totalorder %s3476_s22, %s2658_s24  ;;  %p2663_p6 = scmp.lt.u32.totalorder %s3476_s22, %s3595_s26 }
 0xe18   : > { %p2664_p11 = scmp.lt.u32.totalorder %s2662_s14, %s2658_s24  ;;  %p2666_p5 = scmp.lt.u32.totalorder %s2658_s24, %s3476_s22 }
 0xe19   : > { %p2660_p2 = pnand %p2659_p0, %p3593_p4 }
 0xe1a   : > { %p2665_p8 = por %p2664_p11, %p2663_p6 }
 0xe1b   : > { %p2661_p3 = pneg %p2660_p2 }
 0xe1c   : > { %p2667_p9 = por %p2666_p5, %p2665_p8 }
 0xe1e   : > { %p2668_p7 = pnand %p2667_p9, %p2661_p3 }
 0xe20   : > { %2671 = shalt.err (!%p2668_p7)
}
 0xe21   : > { %2042 = dma.vmem_to_hbm [thread:$0]  (%p3593_p4), %s3478_s2, 128, %s3476_s22, %s1546_s17  }
 0xe22 PF: > { %s3596_s1 = sld [smem:[#allocation39_spill]]  ;;  %p3597_p10 = scmp.ne.s32.totalorder %s3572_s15, 0 }
 0xe23   : > { %p3598_p12 = scmp.ge.s32.totalorder %s2742_s21, 2 }
 0xe25   : > { %p2091_p1 = pnand %p3598_p12, %p3597_p10 }
 0xe28   : > { %s1589_s29 = sand.u32 1, %s3596_s1  }
 0xe29   : > { %s1590_s28 = scalar_lea.sflag [#allocation5], %s1589_s29 }
 0xe2a   : > { %2721 = dma.done.wait (!%p2091_p1), %s1590_s28, 128  }
 0xe2b   : > { %2723 = vsyncadd (!%p2091_p1), %s1590_s28, 4294967168  ;;  %s1599_s3 = scalar_lea.sflag [#allocation28], %s1589_s29 }
 0xe2c   : > { %2725 = dma.done.wait (!%p2091_p1), %s1599_s3, 128  }
 0xe2d   : > { %2727 = vsyncadd (!%p2091_p1), %s1599_s3, 4294967168  ;;  %s3599_s16 = smov %s3219_s18  ;;  %p39_p4 = scmp.ge.s32.totalorder %s3207_s30, 4  }
 0xe2e   : > { %s3600_s18 = smov %s2734_s19  ;;  %s3601_s19 = smov %s2738_s20 }
 0xe2f   : > { %s3602_s20 = smov %s3599_s16  ;;  %s3603_s21 = smov %s3207_s30 }
 0xe30   :  { %41 = sbr.rel (!%p39_p4) target bundleno = 23 (0x17), region = 190 }
 0xe37   :  { %1604 = vsyncpa [#allocation4], 1 }
 0xe38   :  { %1606 = vsyncpa [#allocation4 + $0x1], 1 }
 0xe39   :  { %1607 = vsyncpa [#allocation7], 1 }
 0xe3a   :  { %1608 = vsyncpa [#allocation10], 1 }
 0xe3b   :  { %1609 = vsyncpa [#allocation13], 1 }
 0xe3c   :  { %1610 = vsyncpa [#allocation16], 1 }
 0xe3d   :  { %1611 = vsyncpa [#allocation19], 1 }
 0xe3e   :  { %1612 = vsyncpa [#allocation22], 1 }
 0xe3f   :  { %1613 = vsyncpa [#allocation25], 1 }
 0xe40   :  { %1614 = vsyncpa [#allocation5], 1 }
 0xe41   :  { %1616 = vsyncpa [#allocation5 + $0x1], 1 }
 0xe42   :  { %1617 = vsyncpa [#allocation28], 1 }
 0xe43   :  { %1619 = vsyncpa [#allocation28 + $0x1], 1 }

</bundles_post_ra>
